<compile_context>
chip_gen: v7x
topology: tpu7x:2x2x1
jax: 0.10.0
libtpu: 0.0.40
codegen_flags: <defaults>
</compile_context>

<pallas_src>
import functools

import jax
import jax.numpy as jnp
from jax import lax
from jax.experimental import pallas as pl
from jax.experimental.pallas import tpu as pltpu


_NEG_INF = -10000000000.0   # mask value used by the PyTorch module
_SCALE = 100000.0           # (h_prime + rnd) / 100000.0
_INV_SCALE = 1.0 / _SCALE


def _attention_head(wh, a_src, a_dst, rnd, adj_mask, alpha):
    """One GraphAttentionLayer, given the already-projected features Wh.

    wh:       (N, F)  projected node features (f32)
    a_src:    (1, F)  == a[:F].T  (row / "query" half of the attention vector)
    a_dst:    (1, F)  == a[F:].T  (column / "key" half)
    rnd:      (N, F)  fixed random buffer from the module's __init__
    adj_mask: (N, N)  bool adjacency mask
    """
    # Wh1 = Wh @ a[:F] -> (N, 1).  VPU multiply + lane (XLU) reduce.
    wh1 = jnp.sum(wh * a_src, axis=1, keepdims=True)                       # (N, 1)
    # (Wh @ a[F:]).T -> (1, N), via a dot_general contracting the feature axis
    # of both operands (no explicit transpose / relayout in-kernel).
    wh2_row = lax.dot_general(a_dst, wh, (((1,), (1,)), ((), ())),
                              preferred_element_type=jnp.float32)          # (1, N)
    e = wh1 + wh2_row                                                      # (N, N)
    e = jnp.where(e > 0, e, alpha * e)                                     # LeakyReLU
    e = jnp.where(adj_mask, e, _NEG_INF)                                   # adjacency mask
    # Row softmax (dim=1); denominator reciprocal on the EUP.
    e = e - jnp.max(e, axis=1, keepdims=True)
    p = jnp.exp(e)
    att = p * pl.reciprocal(jnp.sum(p, axis=1, keepdims=True), approx=True)
    h_prime = jnp.dot(att, wh, preferred_element_type=jnp.float32)         # (N, F)
    h_prime = (h_prime + rnd) * _INV_SCALE
    return jnp.where(h_prime > 0, h_prime, jnp.exp(h_prime) - 1.0)         # ELU


def _gat_forward_kernel(x_ref, adj_ref, w1_ref, a1s_ref, a1d_ref, rnd1_ref,
                        w2_ref, a2s_ref, a2d_ref, rnd2_ref,
                        out_ref, *, nheads, alpha):
    adj_mask = adj_ref[...] > 0.0
    x = x_ref[...]

    # ---- layer 1 heads, fused with the out_att projection:
    #   cat(h_0..h_{H-1}, dim=1) @ W2 == sum_h  h_h @ W2[h*nhid:(h+1)*nhid, :]
    # so the concatenated hidden features are never materialized.
    wh_out = None
    for h in range(nheads):                       # static unroll (nheads is small)
        wh = jnp.dot(x, w1_ref[h], preferred_element_type=jnp.float32)     # (N, nhid)
        head = _attention_head(wh, a1s_ref[h], a1d_ref[h], rnd1_ref[h],
                               adj_mask, alpha)                            # (N, nhid)
        part = jnp.dot(head, w2_ref[h], preferred_element_type=jnp.float32)  # (N, out)
        wh_out = part if wh_out is None else wh_out + part

    # ---- output attention layer on the (implicitly concatenated) hidden features.
    out = _attention_head(wh_out, a2s_ref[...], a2d_ref[...], rnd2_ref[...],
                          adj_mask, alpha)
    out_ref[...] = out.astype(out_ref.dtype)


def gat_forward(layer1_params, out_params, p_feat, d_feat, adj, *, alpha):
    """Inference forward of the PyTorch GAT module (dropout = identity)."""
    x = jnp.concatenate([p_feat, d_feat], axis=0)         # torch.cat((p, d), dim=0)
    n_nodes, in_dim = x.shape
    nheads = len(layer1_params)
    nhid = layer1_params[0]["W"].shape[1]
    hid_dim = nheads * nhid
    out_dim = out_params["W"].shape[1]

    # One-time parameter prep into kernel-friendly, transpose-free layouts.
    w1 = jnp.stack([p["W"] for p in layer1_params])                        # (H, in, nhid)
    a1s = jnp.stack([p["a"][:nhid, 0][None, :] for p in layer1_params])    # (H, 1, nhid)
    a1d = jnp.stack([p["a"][nhid:, 0][None, :] for p in layer1_params])    # (H, 1, nhid)
    rnd1 = jnp.stack([p["rnd"] for p in layer1_params])                    # (H, N, nhid)
    w2 = out_params["W"].reshape(nheads, nhid, out_dim)                    # per-head split
    a2s = out_params["a"][:out_dim, 0][None, :]                            # (1, out)
    a2d = out_params["a"][out_dim:, 0][None, :]                            # (1, out)
    rnd2 = out_params["rnd"]                                               # (N, out)

    inputs = (x, adj, w1, a1s, a1d, rnd1, w2, a2s, a2d, rnd2)

    flops = int(
        nheads * (2 * n_nodes * in_dim * nhid             # projections
                  + 4 * n_nodes * nhid                    # score contractions
                  + 2 * n_nodes * n_nodes * nhid)         # aggregation
        + 2 * n_nodes * hid_dim * out_dim
        + 4 * n_nodes * out_dim
        + 2 * n_nodes * n_nodes * out_dim)
    transcendentals = int((nheads + 1) * n_nodes * n_nodes
                          + nheads * n_nodes * nhid + n_nodes * out_dim)
    bytes_accessed = int(sum(a.size for a in inputs) * 4 + n_nodes * out_dim * 4)

    vmem = pl.BlockSpec(memory_space=pltpu.MemorySpace.VMEM)
    out = pl.pallas_call(
        functools.partial(_gat_forward_kernel, nheads=nheads, alpha=alpha),
        out_shape=jax.ShapeDtypeStruct((n_nodes, out_dim), jnp.float32),
        in_specs=[vmem] * len(inputs),
        out_specs=vmem,
        cost_estimate=pl.CostEstimate(flops=flops,
                                      transcendentals=transcendentals,
                                      bytes_accessed=bytes_accessed),
    )(*inputs)

    n_p = p_feat.shape[0]
    return out[:n_p], out[n_p:]


def init_gat_layer_params(key, n_nodes, in_features, out_features):
    """Mimics GraphAttentionLayer.__init__ (xavier_uniform gain=1.414, rnd buffer)."""
    kw, ka, kr = jax.random.split(key, 3)
    gain = 1.414
    w_bound = gain * (6.0 / (in_features + out_features)) ** 0.5
    W = jax.random.uniform(kw, (in_features, out_features), jnp.float32,
                           minval=-w_bound, maxval=w_bound)
    a_bound = gain * (6.0 / (2 * out_features + 1)) ** 0.5
    a = jax.random.uniform(ka, (2 * out_features, 1), jnp.float32,
                           minval=-a_bound, maxval=a_bound)
    rnd = _SCALE * (jax.random.uniform(kr, (n_nodes, out_features), jnp.float32) - 0.5)
    return {"W": W, "a": a, "rnd": rnd}


# ----------------------------- plain-JAX reference -----------------------------
def _ref_gat_layer(h, W, a, rnd, adj, alpha):
    Wh = h @ W
    f_out = W.shape[1]
    e = Wh @ a[:f_out] + (Wh @ a[f_out:]).T
    e = jnp.where(e > 0, e, alpha * e)
    att = jnp.where(adj > 0, e, _NEG_INF)
    att = jax.nn.softmax(att, axis=1)
    hp = (att @ Wh + rnd) / _SCALE
    return jnp.where(hp > 0, hp, jnp.exp(hp) - 1.0)


def _ref_gat_forward(layer1_params, out_params, p_feat, d_feat, adj, alpha):
    x = jnp.concatenate([p_feat, d_feat], axis=0)
    x = jnp.concatenate([_ref_gat_layer(x, p["W"], p["a"], p["rnd"], adj, alpha)
                         for p in layer1_params], axis=1)
    x = _ref_gat_layer(x, out_params["W"], out_params["a"], out_params["rnd"],
                       adj, alpha)
    n_p = p_feat.shape[0]
    return x[:n_p], x[n_p:]


if __name__ == "__main__":
    key = jax.random.PRNGKey(0)

    # Small shapes consistent with the module's forward, chosen lane-dense
    # (feature dims are multiples of 128) so loads/stores are full vregs.
    N_P, N_D = 24, 8                   # protein / drug node counts
    N = N_P + N_D
    IN_DIM = 128                       # input feature dim
    NHEADS = 2                         # layer-1 heads
    NHID = 128                         # hidden per head -> hid_dim = 256
    OUT_DIM = 128                      # out_att output dim
    ALPHA = 0.2                        # LeakyReLU slope
    # dropout = 0.5 in the module; identity at inference.

    keys = jax.random.split(key, 4 + NHEADS)
    p_feat = jax.random.normal(keys[0], (N_P, IN_DIM), jnp.float32)
    d_feat = jax.random.normal(keys[1], (N_D, IN_DIM), jnp.float32)
    adj = (jax.random.uniform(keys[2], (N, N)) > 0.5).astype(jnp.float32)
    adj = jnp.maximum(adj, jnp.eye(N, dtype=jnp.float32))    # self-loops

    layer1_params = [init_gat_layer_params(keys[3 + h], N, IN_DIM, NHID)
                     for h in range(NHEADS)]
    out_params = init_gat_layer_params(keys[3 + NHEADS], N, NHEADS * NHID, OUT_DIM)

    p_out, d_out = gat_forward(layer1_params, out_params, p_feat, d_feat, adj,
                               alpha=ALPHA)
    jax.block_until_ready((p_out, d_out))

    # Correctness check against a plain-JAX reference of the same forward.
    ref_p, ref_d = _ref_gat_forward(layer1_params, out_params, p_feat, d_feat,
                                    adj, ALPHA)
    assert p_out.shape == (N_P, OUT_DIM) and d_out.shape == (N_D, OUT_DIM)
    assert jnp.allclose(p_out, ref_p, atol=1e-4, rtol=1e-4)
    assert jnp.allclose(d_out, ref_d, atol=1e-4, rtol=1e-4)
    print("KERNEL_OK")
</pallas_src>

<mosaic_0001>
module attributes {stable_mosaic.version = 11 : i64} {
  func.func @_gat_forward_kernel(%arg0: memref<32x128xf32, #tpu.memory_space<vmem>>, %arg1: memref<32x32xf32, #tpu.memory_space<vmem>>, %arg2: memref<2x128x128xf32, #tpu.memory_space<vmem>>, %arg3: memref<2x1x128xf32, #tpu.memory_space<vmem>>, %arg4: memref<2x1x128xf32, #tpu.memory_space<vmem>>, %arg5: memref<2x32x128xf32, #tpu.memory_space<vmem>>, %arg6: memref<2x128x128xf32, #tpu.memory_space<vmem>>, %arg7: memref<1x128xf32, #tpu.memory_space<vmem>>, %arg8: memref<1x128xf32, #tpu.memory_space<vmem>>, %arg9: memref<32x128xf32, #tpu.memory_space<vmem>>, %arg10: memref<32x128xf32, #tpu.memory_space<vmem>>) attributes {dimension_semantics = [], scalar_prefetch = 0 : i64, scratch_operands = 0 : i64, tpu.core_type = #tpu.core_type<tc>} {
    %c0 = arith.constant 0 : index
    %c0_0 = arith.constant 0 : index
    %0 = vector.load %arg1[%c0, %c0_0] : memref<32x32xf32, #tpu.memory_space<vmem>>, vector<32x32xf32>
    %cst = arith.constant 0.000000e+00 : f32
    %1 = vector.broadcast %cst : f32 to vector<32x32xf32>
    %2 = arith.cmpf ogt, %0, %1 : vector<32x32xf32>
    %c0_1 = arith.constant 0 : index
    %c0_2 = arith.constant 0 : index
    %3 = vector.load %arg0[%c0_1, %c0_2] : memref<32x128xf32, #tpu.memory_space<vmem>>, vector<32x128xf32>
    %c0_3 = arith.constant 0 : index
    %c0_4 = arith.constant 0 : index
    %c0_5 = arith.constant 0 : index
    %4 = vector.load %arg2[%c0_3, %c0_4, %c0_5] : memref<2x128x128xf32, #tpu.memory_space<vmem>>, vector<1x128x128xf32>
    %5 = vector.shape_cast %4 : vector<1x128x128xf32> to vector<128x128xf32>
    %cst_6 = arith.constant dense<0.000000e+00> : vector<32x128xf32>
    %6 = tpu.matmul %3, %5, %cst_6 {dimension_numbers = #tpu.dot_dimension_numbers<[1], [0], [0], [1], [0, 0, 1, 1], [], []>} : vector<32x128xf32>, vector<128x128xf32>, vector<32x128xf32> -> vector<32x128xf32>
    %c0_7 = arith.constant 0 : index
    %c0_8 = arith.constant 0 : index
    %c0_9 = arith.constant 0 : index
    %7 = vector.load %arg3[%c0_7, %c0_8, %c0_9] : memref<2x1x128xf32, #tpu.memory_space<vmem>>, vector<1x1x128xf32>
    %8 = vector.shape_cast %7 : vector<1x1x128xf32> to vector<1x128xf32>
    %c0_10 = arith.constant 0 : index
    %c0_11 = arith.constant 0 : index
    %c0_12 = arith.constant 0 : index
    %9 = vector.load %arg4[%c0_10, %c0_11, %c0_12] : memref<2x1x128xf32, #tpu.memory_space<vmem>>, vector<1x1x128xf32>
    %10 = vector.shape_cast %9 : vector<1x1x128xf32> to vector<1x128xf32>
    %c0_13 = arith.constant 0 : index
    %c0_14 = arith.constant 0 : index
    %c0_15 = arith.constant 0 : index
    %11 = vector.load %arg5[%c0_13, %c0_14, %c0_15] : memref<2x32x128xf32, #tpu.memory_space<vmem>>, vector<1x32x128xf32>
    %12 = vector.shape_cast %11 : vector<1x32x128xf32> to vector<32x128xf32>
    %13 = vector.broadcast %8 : vector<1x128xf32> to vector<32x128xf32>
    %14 = arith.mulf %6, %13 : vector<32x128xf32>
    %cst_16 = arith.constant dense<0.000000e+00> : vector<32xf32>
    %15 = vector.multi_reduction <add>, %14, %cst_16 [1] : vector<32x128xf32> to vector<32xf32>
    %16 = vector.shape_cast %15 : vector<32xf32> to vector<32x1xf32>
    %cst_17 = arith.constant dense<0.000000e+00> : vector<1x32xf32>
    %17 = tpu.matmul %10, %6, %cst_17 {dimension_numbers = #tpu.dot_dimension_numbers<[1], [1], [0], [0], [0, 0, 1, 0], [], []>} : vector<1x128xf32>, vector<32x128xf32>, vector<1x32xf32> -> vector<1x32xf32>
    %18 = vector.broadcast %16 : vector<32x1xf32> to vector<32x32xf32>
    %19 = vector.broadcast %17 : vector<1x32xf32> to vector<32x32xf32>
    %20 = arith.addf %18, %19 : vector<32x32xf32>
    %cst_18 = arith.constant 0.000000e+00 : f32
    %21 = vector.broadcast %cst_18 : f32 to vector<32x32xf32>
    %22 = arith.cmpf ogt, %20, %21 : vector<32x32xf32>
    %cst_19 = arith.constant 2.000000e-01 : f32
    %23 = vector.broadcast %cst_19 : f32 to vector<32x32xf32>
    %24 = arith.mulf %23, %20 : vector<32x32xf32>
    %25 = arith.select %22, %20, %24 : vector<32x32xi1>, vector<32x32xf32>
    %cst_20 = arith.constant -1.000000e+10 : f32
    %26 = vector.broadcast %cst_20 : f32 to vector<32x32xf32>
    %27 = arith.select %2, %25, %26 : vector<32x32xi1>, vector<32x32xf32>
    %cst_21 = arith.constant dense<0xFF800000> : vector<32xf32>
    %28 = vector.multi_reduction <maximumf>, %27, %cst_21 [1] : vector<32x32xf32> to vector<32xf32>
    %29 = vector.shape_cast %28 : vector<32xf32> to vector<32x1xf32>
    %30 = vector.broadcast %29 : vector<32x1xf32> to vector<32x32xf32>
    %31 = arith.subf %27, %30 : vector<32x32xf32>
    %32 = math.exp %31 : vector<32x32xf32>
    %cst_22 = arith.constant dense<0.000000e+00> : vector<32xf32>
    %33 = vector.multi_reduction <add>, %32, %cst_22 [1] : vector<32x32xf32> to vector<32xf32>
    %34 = vector.shape_cast %33 : vector<32xf32> to vector<32x1xf32>
    %35 = tpu.reciprocal %34 {approx = true} : vector<32x1xf32> -> vector<32x1xf32>
    %36 = vector.broadcast %35 : vector<32x1xf32> to vector<32x32xf32>
    %37 = arith.mulf %32, %36 : vector<32x32xf32>
    %cst_23 = arith.constant dense<0.000000e+00> : vector<32x128xf32>
    %38 = tpu.matmul %37, %6, %cst_23 {dimension_numbers = #tpu.dot_dimension_numbers<[1], [0], [0], [1], [0, 0, 1, 1], [], []>} : vector<32x32xf32>, vector<32x128xf32>, vector<32x128xf32> -> vector<32x128xf32>
    %39 = arith.addf %38, %12 : vector<32x128xf32>
    %cst_24 = arith.constant 9.99999974E-6 : f32
    %40 = vector.broadcast %cst_24 : f32 to vector<32x128xf32>
    %41 = arith.mulf %39, %40 : vector<32x128xf32>
    %cst_25 = arith.constant 0.000000e+00 : f32
    %42 = vector.broadcast %cst_25 : f32 to vector<32x128xf32>
    %43 = arith.cmpf ogt, %41, %42 : vector<32x128xf32>
    %44 = math.exp %41 : vector<32x128xf32>
    %cst_26 = arith.constant 1.000000e+00 : f32
    %45 = vector.broadcast %cst_26 : f32 to vector<32x128xf32>
    %46 = arith.subf %44, %45 : vector<32x128xf32>
    %47 = arith.select %43, %41, %46 : vector<32x128xi1>, vector<32x128xf32>
    %c0_27 = arith.constant 0 : index
    %c0_28 = arith.constant 0 : index
    %c0_29 = arith.constant 0 : index
    %48 = vector.load %arg6[%c0_27, %c0_28, %c0_29] : memref<2x128x128xf32, #tpu.memory_space<vmem>>, vector<1x128x128xf32>
    %49 = vector.shape_cast %48 : vector<1x128x128xf32> to vector<128x128xf32>
    %cst_30 = arith.constant dense<0.000000e+00> : vector<32x128xf32>
    %50 = tpu.matmul %47, %49, %cst_30 {dimension_numbers = #tpu.dot_dimension_numbers<[1], [0], [0], [1], [0, 0, 1, 1], [], []>} : vector<32x128xf32>, vector<128x128xf32>, vector<32x128xf32> -> vector<32x128xf32>
    %c1 = arith.constant 1 : index
    %c0_31 = arith.constant 0 : index
    %c0_32 = arith.constant 0 : index
    %51 = vector.load %arg2[%c1, %c0_31, %c0_32] : memref<2x128x128xf32, #tpu.memory_space<vmem>>, vector<1x128x128xf32>
    %52 = vector.shape_cast %51 : vector<1x128x128xf32> to vector<128x128xf32>
    %cst_33 = arith.constant dense<0.000000e+00> : vector<32x128xf32>
    %53 = tpu.matmul %3, %52, %cst_33 {dimension_numbers = #tpu.dot_dimension_numbers<[1], [0], [0], [1], [0, 0, 1, 1], [], []>} : vector<32x128xf32>, vector<128x128xf32>, vector<32x128xf32> -> vector<32x128xf32>
    %c1_34 = arith.constant 1 : index
    %c0_35 = arith.constant 0 : index
    %c0_36 = arith.constant 0 : index
    %54 = vector.load %arg3[%c1_34, %c0_35, %c0_36] : memref<2x1x128xf32, #tpu.memory_space<vmem>>, vector<1x1x128xf32>
    %55 = vector.shape_cast %54 : vector<1x1x128xf32> to vector<1x128xf32>
    %c1_37 = arith.constant 1 : index
    %c0_38 = arith.constant 0 : index
    %c0_39 = arith.constant 0 : index
    %56 = vector.load %arg4[%c1_37, %c0_38, %c0_39] : memref<2x1x128xf32, #tpu.memory_space<vmem>>, vector<1x1x128xf32>
    %57 = vector.shape_cast %56 : vector<1x1x128xf32> to vector<1x128xf32>
    %c1_40 = arith.constant 1 : index
    %c0_41 = arith.constant 0 : index
    %c0_42 = arith.constant 0 : index
    %58 = vector.load %arg5[%c1_40, %c0_41, %c0_42] : memref<2x32x128xf32, #tpu.memory_space<vmem>>, vector<1x32x128xf32>
    %59 = vector.shape_cast %58 : vector<1x32x128xf32> to vector<32x128xf32>
    %60 = vector.broadcast %55 : vector<1x128xf32> to vector<32x128xf32>
    %61 = arith.mulf %53, %60 : vector<32x128xf32>
    %cst_43 = arith.constant dense<0.000000e+00> : vector<32xf32>
    %62 = vector.multi_reduction <add>, %61, %cst_43 [1] : vector<32x128xf32> to vector<32xf32>
    %63 = vector.shape_cast %62 : vector<32xf32> to vector<32x1xf32>
    %cst_44 = arith.constant dense<0.000000e+00> : vector<1x32xf32>
    %64 = tpu.matmul %57, %53, %cst_44 {dimension_numbers = #tpu.dot_dimension_numbers<[1], [1], [0], [0], [0, 0, 1, 0], [], []>} : vector<1x128xf32>, vector<32x128xf32>, vector<1x32xf32> -> vector<1x32xf32>
    %65 = vector.broadcast %63 : vector<32x1xf32> to vector<32x32xf32>
    %66 = vector.broadcast %64 : vector<1x32xf32> to vector<32x32xf32>
    %67 = arith.addf %65, %66 : vector<32x32xf32>
    %cst_45 = arith.constant 0.000000e+00 : f32
    %68 = vector.broadcast %cst_45 : f32 to vector<32x32xf32>
    %69 = arith.cmpf ogt, %67, %68 : vector<32x32xf32>
    %cst_46 = arith.constant 2.000000e-01 : f32
    %70 = vector.broadcast %cst_46 : f32 to vector<32x32xf32>
    %71 = arith.mulf %70, %67 : vector<32x32xf32>
    %72 = arith.select %69, %67, %71 : vector<32x32xi1>, vector<32x32xf32>
    %cst_47 = arith.constant -1.000000e+10 : f32
    %73 = vector.broadcast %cst_47 : f32 to vector<32x32xf32>
    %74 = arith.select %2, %72, %73 : vector<32x32xi1>, vector<32x32xf32>
    %cst_48 = arith.constant dense<0xFF800000> : vector<32xf32>
    %75 = vector.multi_reduction <maximumf>, %74, %cst_48 [1] : vector<32x32xf32> to vector<32xf32>
    %76 = vector.shape_cast %75 : vector<32xf32> to vector<32x1xf32>
    %77 = vector.broadcast %76 : vector<32x1xf32> to vector<32x32xf32>
    %78 = arith.subf %74, %77 : vector<32x32xf32>
    %79 = math.exp %78 : vector<32x32xf32>
    %cst_49 = arith.constant dense<0.000000e+00> : vector<32xf32>
    %80 = vector.multi_reduction <add>, %79, %cst_49 [1] : vector<32x32xf32> to vector<32xf32>
    %81 = vector.shape_cast %80 : vector<32xf32> to vector<32x1xf32>
    %82 = tpu.reciprocal %81 {approx = true} : vector<32x1xf32> -> vector<32x1xf32>
    %83 = vector.broadcast %82 : vector<32x1xf32> to vector<32x32xf32>
    %84 = arith.mulf %79, %83 : vector<32x32xf32>
    %cst_50 = arith.constant dense<0.000000e+00> : vector<32x128xf32>
    %85 = tpu.matmul %84, %53, %cst_50 {dimension_numbers = #tpu.dot_dimension_numbers<[1], [0], [0], [1], [0, 0, 1, 1], [], []>} : vector<32x32xf32>, vector<32x128xf32>, vector<32x128xf32> -> vector<32x128xf32>
    %86 = arith.addf %85, %59 : vector<32x128xf32>
    %cst_51 = arith.constant 9.99999974E-6 : f32
    %87 = vector.broadcast %cst_51 : f32 to vector<32x128xf32>
    %88 = arith.mulf %86, %87 : vector<32x128xf32>
    %cst_52 = arith.constant 0.000000e+00 : f32
    %89 = vector.broadcast %cst_52 : f32 to vector<32x128xf32>
    %90 = arith.cmpf ogt, %88, %89 : vector<32x128xf32>
    %91 = math.exp %88 : vector<32x128xf32>
    %cst_53 = arith.constant 1.000000e+00 : f32
    %92 = vector.broadcast %cst_53 : f32 to vector<32x128xf32>
    %93 = arith.subf %91, %92 : vector<32x128xf32>
    %94 = arith.select %90, %88, %93 : vector<32x128xi1>, vector<32x128xf32>
    %c1_54 = arith.constant 1 : index
    %c0_55 = arith.constant 0 : index
    %c0_56 = arith.constant 0 : index
    %95 = vector.load %arg6[%c1_54, %c0_55, %c0_56] : memref<2x128x128xf32, #tpu.memory_space<vmem>>, vector<1x128x128xf32>
    %96 = vector.shape_cast %95 : vector<1x128x128xf32> to vector<128x128xf32>
    %cst_57 = arith.constant dense<0.000000e+00> : vector<32x128xf32>
    %97 = tpu.matmul %94, %96, %cst_57 {dimension_numbers = #tpu.dot_dimension_numbers<[1], [0], [0], [1], [0, 0, 1, 1], [], []>} : vector<32x128xf32>, vector<128x128xf32>, vector<32x128xf32> -> vector<32x128xf32>
    %98 = arith.addf %50, %97 : vector<32x128xf32>
    %c0_58 = arith.constant 0 : index
    %c0_59 = arith.constant 0 : index
    %99 = vector.load %arg7[%c0_58, %c0_59] : memref<1x128xf32, #tpu.memory_space<vmem>>, vector<1x128xf32>
    %c0_60 = arith.constant 0 : index
    %c0_61 = arith.constant 0 : index
    %100 = vector.load %arg8[%c0_60, %c0_61] : memref<1x128xf32, #tpu.memory_space<vmem>>, vector<1x128xf32>
    %c0_62 = arith.constant 0 : index
    %c0_63 = arith.constant 0 : index
    %101 = vector.load %arg9[%c0_62, %c0_63] : memref<32x128xf32, #tpu.memory_space<vmem>>, vector<32x128xf32>
    %102 = vector.broadcast %99 : vector<1x128xf32> to vector<32x128xf32>
    %103 = arith.mulf %98, %102 : vector<32x128xf32>
    %cst_64 = arith.constant dense<0.000000e+00> : vector<32xf32>
    %104 = vector.multi_reduction <add>, %103, %cst_64 [1] : vector<32x128xf32> to vector<32xf32>
    %105 = vector.shape_cast %104 : vector<32xf32> to vector<32x1xf32>
    %cst_65 = arith.constant dense<0.000000e+00> : vector<1x32xf32>
    %106 = tpu.matmul %100, %98, %cst_65 {dimension_numbers = #tpu.dot_dimension_numbers<[1], [1], [0], [0], [0, 0, 1, 0], [], []>} : vector<1x128xf32>, vector<32x128xf32>, vector<1x32xf32> -> vector<1x32xf32>
    %107 = vector.broadcast %105 : vector<32x1xf32> to vector<32x32xf32>
    %108 = vector.broadcast %106 : vector<1x32xf32> to vector<32x32xf32>
    %109 = arith.addf %107, %108 : vector<32x32xf32>
    %cst_66 = arith.constant 0.000000e+00 : f32
    %110 = vector.broadcast %cst_66 : f32 to vector<32x32xf32>
    %111 = arith.cmpf ogt, %109, %110 : vector<32x32xf32>
    %cst_67 = arith.constant 2.000000e-01 : f32
    %112 = vector.broadcast %cst_67 : f32 to vector<32x32xf32>
    %113 = arith.mulf %112, %109 : vector<32x32xf32>
    %114 = arith.select %111, %109, %113 : vector<32x32xi1>, vector<32x32xf32>
    %cst_68 = arith.constant -1.000000e+10 : f32
    %115 = vector.broadcast %cst_68 : f32 to vector<32x32xf32>
    %116 = arith.select %2, %114, %115 : vector<32x32xi1>, vector<32x32xf32>
    %cst_69 = arith.constant dense<0xFF800000> : vector<32xf32>
    %117 = vector.multi_reduction <maximumf>, %116, %cst_69 [1] : vector<32x32xf32> to vector<32xf32>
    %118 = vector.shape_cast %117 : vector<32xf32> to vector<32x1xf32>
    %119 = vector.broadcast %118 : vector<32x1xf32> to vector<32x32xf32>
    %120 = arith.subf %116, %119 : vector<32x32xf32>
    %121 = math.exp %120 : vector<32x32xf32>
    %cst_70 = arith.constant dense<0.000000e+00> : vector<32xf32>
    %122 = vector.multi_reduction <add>, %121, %cst_70 [1] : vector<32x32xf32> to vector<32xf32>
    %123 = vector.shape_cast %122 : vector<32xf32> to vector<32x1xf32>
    %124 = tpu.reciprocal %123 {approx = true} : vector<32x1xf32> -> vector<32x1xf32>
    %125 = vector.broadcast %124 : vector<32x1xf32> to vector<32x32xf32>
    %126 = arith.mulf %121, %125 : vector<32x32xf32>
    %cst_71 = arith.constant dense<0.000000e+00> : vector<32x128xf32>
    %127 = tpu.matmul %126, %98, %cst_71 {dimension_numbers = #tpu.dot_dimension_numbers<[1], [0], [0], [1], [0, 0, 1, 1], [], []>} : vector<32x32xf32>, vector<32x128xf32>, vector<32x128xf32> -> vector<32x128xf32>
    %128 = arith.addf %127, %101 : vector<32x128xf32>
    %cst_72 = arith.constant 9.99999974E-6 : f32
    %129 = vector.broadcast %cst_72 : f32 to vector<32x128xf32>
    %130 = arith.mulf %128, %129 : vector<32x128xf32>
    %cst_73 = arith.constant 0.000000e+00 : f32
    %131 = vector.broadcast %cst_73 : f32 to vector<32x128xf32>
    %132 = arith.cmpf ogt, %130, %131 : vector<32x128xf32>
    %133 = math.exp %130 : vector<32x128xf32>
    %cst_74 = arith.constant 1.000000e+00 : f32
    %134 = vector.broadcast %cst_74 : f32 to vector<32x128xf32>
    %135 = arith.subf %133, %134 : vector<32x128xf32>
    %136 = arith.select %132, %130, %135 : vector<32x128xi1>, vector<32x128xf32>
    %c0_75 = arith.constant 0 : index
    %c0_76 = arith.constant 0 : index
    %137 = vector.load %arg10[%c0_75, %c0_76] : memref<32x128xf32, #tpu.memory_space<vmem>>, vector<32x128xf32>
    tpu.vector_store %arg10[%c0_75, %c0_76], %136 {strides = array<i32>} : memref<32x128xf32, #tpu.memory_space<vmem>>, vector<32x128xf32>,
    return
  }
}

</mosaic_0001>

<bundles_post_ra>
// kernel: tpu_custom_call.1
= control target key start
LH: loop header
LB: loop body
LE: loop exit
PB: predicated region body
PF: predicated region fallthrough
CT: control target
= control target key end

     0   :  { %15 = vsyncpa [#allocation3], 0  ;;  %s2636_s0 = inlined_call_operand.hbm [shape: f32[32,128], index: 0, kind: input, shape index: {}]   ;;  %s2637_s1 = inlined_call_operand.hbm [shape: f32[32,32], index: 1, kind: input, shape index: {}]   ;;  %s2638_s2 = inlined_call_operand.hbm [shape: f32[2,128,128], index: 2, kind: input, shape index: {}]   ;;  %s2639_s3 = inlined_call_operand.vmem [shape: f32[2,1,128], index: 3, kind: input, shape index: {}]   ;;  %s2640_s4 = inlined_call_operand.hbm [shape: f32[2,1,128], index: 4, kind: input, shape index: {}]   ;;  %s2641_s5 = inlined_call_operand.hbm [shape: f32[2,32,128], index: 5, kind: input, shape index: {}]   ;;  %s2642_s6 = inlined_call_operand.hbm [shape: f32[2,128,128], index: 6, kind: input, shape index: {}]   ;;  %s2643_s7 = inlined_call_operand.hbm [shape: f32[1,128], index: 7, kind: input, shape index: {}]   ;;  %s2644_s8 = inlined_call_operand.hbm [shape: f32[1,128], index: 8, kind: input, shape index: {}]   ;;  %s2645_s9 = inlined_call_operand.vmem [shape: f32[32,128], index: 9, kind: input, shape index: {}]   ;;  %s2646_s10 = inlined_call_operand.hbm [shape: f32[32,128], index: 10, kind: output, shape index: {}]  }
   0x1   :  { %16 = vsyncpa [#allocation6], 0 }
   0x2   :  { %17 = vsyncpa [#allocation9], 0 }
   0x3   :  { %18 = vsyncpa [#allocation12], 0 }
   0x4   :  { %19 = vsyncpa [#allocation15], 0 }
   0x5   :  { %20 = vsyncpa [#allocation4], 0  ;;  %s2283_s13 = smov [#allocation5]   ;;  %s2284_s15 = smov [#allocation8]  }
   0x6   :  { %s38_s14 = sshll.u32 %s2283_s13, 4  ;;  %s64_s16 = sshll.u32 %s2284_s15, 4  ;;  %s39_s14 = int_to_ptr.vmem [resolvable:$true] %s38_s14  ;;  %s2354_s16 = int_to_ptr.vmem [resolvable:$true] %s64_s16 }
   0x7   :  { %s2073_s19 = scalar_lea.hbm %s2637_s1, 512 }
   0x8   :  { %p2074_p0 = scmp.ne.s32.totalorder %s2637_s1, %s2073_s19  ;;  %p2077_p1 = scmp.lt.u32.totalorder %s2073_s19, %s2637_s1 }
   0xa   :  { %p2079_p2 = pnand %p2077_p1, %p2074_p0 }
   0xc   :  { %2082 = shalt.err (!%p2079_p2)
}
   0xd   :  { %s2083_s24 = scalar_lea.vmem %s39_s14, 512  ;;  %p2088_p4 = scmp.lt.s32.totalorder %s39_s14, %s39_s14 }
   0xe   :  { %p2084_p3 = scmp.ne.s32.totalorder %s39_s14, %s2083_s24  ;;  %p2089_p5 = scmp.lt.s32.totalorder %s2083_s24, %s2083_s24 }
  0x10   :  { %p2090_p6 = por %p2089_p5, %p2088_p4 }
  0x12   :  { %p2091_p7 = pnand %p2090_p6, %p2084_p3 }
  0x14   :  { %2094 = shalt.err (!%p2091_p7)
}
  0x15   :  { %s2285_s25 = smov 128   ;;  %s2286_s26 = smov 8  }
  0x16   :  { %44 = dma.hbm_to_vmem [thread:$0]  %s2637_s1, 512, %s39_s14, [#allocation6], %s2285_s25, %s2285_s25, %s2286_s26  }
  0x17   :  { %s2095_s11 = scalar_lea.hbm %s2640_s4, 32 }
  0x18   :  { %p2096_p8 = scmp.ne.s32.totalorder %s2640_s4, %s2095_s11  ;;  %p2099_p9 = scmp.lt.u32.totalorder %s2095_s11, %s2640_s4 }
  0x1a   :  { %p2101_p10 = pnand %p2099_p9, %p2096_p8 }
  0x1c   :  { %2104 = shalt.err (!%p2101_p10)
}
  0x1d   :  { %s2105_s18 = scalar_lea.vmem %s2354_s16, 32  ;;  %p2110_p12 = scmp.lt.s32.totalorder %s2354_s16, %s2354_s16 }
  0x1e   :  { %p2106_p11 = scmp.ne.s32.totalorder %s2354_s16, %s2105_s18  ;;  %p2111_p13 = scmp.lt.s32.totalorder %s2105_s18, %s2105_s18 }
  0x20   :  { %p2112_p0 = por %p2111_p13, %p2110_p12 }
  0x22   :  { %p2113_p1 = pnand %p2112_p0, %p2106_p11 }
  0x24   :  { %2116 = shalt.err (!%p2113_p1)
}
  0x25   :  { %s2287_s1 = smov 16   ;;  %s2288_s14 = smov 1  }
  0x26   :  { %70 = dma.hbm_to_vmem [thread:$0]  %s2640_s4, 32, %s2354_s16, [#allocation9], %s2287_s1, %s2287_s1, %s2288_s14  }
  0x27   :  { %s2289_s21 = smov [#allocation11]   ;;  %s2290_s23 = smov [#allocation2]  }
  0x28   :  { %s88_s22 = sshll.u32 %s2289_s21, 4  ;;  %s26_s24 = sshll.u32 %s2290_s23, 4  ;;  %s89_s22 = int_to_ptr.vmem [resolvable:$true] %s88_s22  ;;  %s2388_s24 = int_to_ptr.vmem [resolvable:$true] %s26_s24 }
  0x29   :  { %s2117_s29 = scalar_lea.hbm %s2642_s6, 4096 }
  0x2a   :  { %p2118_p2 = scmp.ne.s32.totalorder %s2642_s6, %s2117_s29  ;;  %p2121_p3 = scmp.lt.u32.totalorder %s2117_s29, %s2642_s6 }
  0x2c   :  { %p2123_p4 = pnand %p2121_p3, %p2118_p2 }
  0x2e   :  { %2126 = shalt.err (!%p2123_p4)
}
  0x2f   :  { %s2127_s4 = scalar_lea.vmem %s89_s22, 4096  ;;  %p2132_p6 = scmp.lt.s32.totalorder %s89_s22, %s89_s22 }
  0x30   :  { %p2128_p5 = scmp.ne.s32.totalorder %s89_s22, %s2127_s4  ;;  %p2133_p7 = scmp.lt.s32.totalorder %s2127_s4, %s2127_s4 }
  0x32   :  { %p2134_p8 = por %p2133_p7, %p2132_p6 }
  0x34   :  { %p2135_p9 = pnand %p2134_p8, %p2128_p5 }
  0x36   :  { %2138 = shalt.err (!%p2135_p9)
}
  0x37   :  { %94 = dma.hbm_to_vmem [thread:$0]  %s2642_s6, 4096, %s89_s22, [#allocation12], %s2285_s25, %s2285_s25, %s2286_s26  }
  0x38   :  { %s2139_s1 = scalar_lea.hbm %s2636_s0, 512 }
  0x39   :  { %p2140_p10 = scmp.ne.s32.totalorder %s2636_s0, %s2139_s1  ;;  %p2143_p11 = scmp.lt.u32.totalorder %s2139_s1, %s2636_s0 }
  0x3b   :  { %p2145_p12 = pnand %p2143_p11, %p2140_p10 }
  0x3d   :  { %2148 = shalt.err (!%p2145_p12)
}
  0x3e   :  { %s2149_s23 = scalar_lea.vmem %s2388_s24, 512  ;;  %p2154_p0 = scmp.lt.s32.totalorder %s2388_s24, %s2388_s24 }
  0x3f   :  { %p2150_p13 = scmp.ne.s32.totalorder %s2388_s24, %s2149_s23  ;;  %p2155_p1 = scmp.lt.s32.totalorder %s2149_s23, %s2149_s23 }
  0x41   :  { %p2156_p2 = por %p2155_p1, %p2154_p0 }
  0x43   :  { %p2157_p3 = pnand %p2156_p2, %p2150_p13 }
  0x45   :  { %2160 = shalt.err (!%p2157_p3)
}
  0x46   :  { %32 = dma.hbm_to_vmem [thread:$0]  %s2636_s0, 512, %s2388_s24, [#allocation3], %s2285_s25, %s2285_s25, %s2286_s26  }
  0x47   :  { %s2291_s27 = smov [#allocation7]   ;;  %s2292_s29 = smov [#allocation10]  }
  0x48   :  { %s50_s28 = sshll.u32 %s2291_s27, 4  ;;  %s76_s30 = sshll.u32 %s2292_s29, 4  ;;  %s51_s28 = int_to_ptr.vmem [resolvable:$true] %s50_s28  ;;  %s2425_s30 = int_to_ptr.vmem [resolvable:$true] %s76_s30 }
  0x49   :  { %s2161_s13 = scalar_lea.hbm %s2638_s2, 4096 }
  0x4a   :  { %p2162_p4 = scmp.ne.s32.totalorder %s2638_s2, %s2161_s13  ;;  %p2165_p5 = scmp.lt.u32.totalorder %s2161_s13, %s2638_s2 }
  0x4c   :  { %p2167_p6 = pnand %p2165_p5, %p2162_p4 }
  0x4e   :  { %2170 = shalt.err (!%p2167_p6)
}
  0x4f   :  { %s2171_s0 = scalar_lea.vmem %s51_s28, 4096  ;;  %p2176_p8 = scmp.lt.s32.totalorder %s51_s28, %s51_s28 }
  0x50   :  { %p2172_p7 = scmp.ne.s32.totalorder %s51_s28, %s2171_s0  ;;  %p2177_p9 = scmp.lt.s32.totalorder %s2171_s0, %s2171_s0 }
  0x52   :  { %p2178_p10 = por %p2177_p9, %p2176_p8 }
  0x54   :  { %p2179_p11 = pnand %p2178_p10, %p2172_p7 }
  0x56   :  { %2182 = shalt.err (!%p2179_p11)
}
  0x57   :  { %56 = dma.hbm_to_vmem [thread:$0]  %s2638_s2, 4096, %s51_s28, [#allocation6], %s2285_s25, %s2285_s25, %s2286_s26  }
  0x58   :  { %s2183_s19 = scalar_lea.hbm %s2641_s5, 1024 }
  0x59   :  { %p2184_p12 = scmp.ne.s32.totalorder %s2641_s5, %s2183_s19  ;;  %p2187_p13 = scmp.lt.u32.totalorder %s2183_s19, %s2641_s5 }
  0x5b   :  { %p2189_p0 = pnand %p2187_p13, %p2184_p12 }
  0x5d   :  { %2192 = shalt.err (!%p2189_p0)
}
  0x5e   :  { %s2193_s22 = scalar_lea.vmem %s2425_s30, 1024  ;;  %p2198_p2 = scmp.lt.s32.totalorder %s2425_s30, %s2425_s30 }
  0x5f   :  { %p2194_p1 = scmp.ne.s32.totalorder %s2425_s30, %s2193_s22  ;;  %p2199_p3 = scmp.lt.s32.totalorder %s2193_s22, %s2193_s22 }
  0x61   :  { %p2200_p4 = por %p2199_p3, %p2198_p2 }
  0x63   :  { %p2201_p5 = pnand %p2200_p4, %p2194_p1 }
  0x65   :  { %2204 = shalt.err (!%p2201_p5)
}
  0x66   :  { %82 = dma.hbm_to_vmem [thread:$0]  %s2641_s5, 1024, %s2425_s30, [#allocation9], %s2285_s25, %s2285_s25, %s2286_s26  }
  0x67   :  { %s2293_s28 = smov [#allocation13]   ;;  %s2294_s11 = smov [#allocation14]  }
  0x68   :  { %s101_s29 = sshll.u32 %s2293_s28, 4  ;;  %s111_s12 = sshll.u32 %s2294_s11, 4  ;;  %s102_s29 = int_to_ptr.vmem [resolvable:$true] %s101_s29  ;;  %s112_s12 = int_to_ptr.vmem [resolvable:$true] %s111_s12 }
  0x69   :  { %s2205_s16 = scalar_lea.hbm %s2643_s7, 16 }
  0x6a   :  { %p2206_p6 = scmp.ne.s32.totalorder %s2643_s7, %s2205_s16  ;;  %p2209_p7 = scmp.lt.u32.totalorder %s2205_s16, %s2643_s7 }
  0x6c   :  { %p2211_p8 = pnand %p2209_p7, %p2206_p6 }
  0x6e   :  { %2214 = shalt.err (!%p2211_p8)
}
  0x6f   :  { %s2215_s5 = scalar_lea.vmem %s102_s29, 16  ;;  %s2219_s30 = scalar_lea.vmem %s102_s29, 32 }
  0x70   :  { %p2216_p9 = scmp.ne.s32.totalorder %s102_s29, %s2215_s5  ;;  %p2220_p10 = scmp.lt.s32.totalorder %s102_s29, %s102_s29 }
  0x71   :  { %p2221_p11 = scmp.lt.s32.totalorder %s2219_s30, %s2215_s5 }
  0x73   :  { %p2222_p12 = por %p2221_p11, %p2220_p10 }
  0x75   :  { %p2223_p13 = pnand %p2222_p12, %p2216_p9 }
  0x77   :  { %2226 = shalt.err (!%p2223_p13)
}
  0x78   :  { %104 = dma.hbm_to_vmem [thread:$0]  %s2643_s7, 16, %s102_s29, [#allocation12]  }
  0x79   :  { %s2227_s20 = scalar_lea.hbm %s2644_s8, 16 }
  0x7a   :  { %p2228_p0 = scmp.ne.s32.totalorder %s2644_s8, %s2227_s20  ;;  %p2231_p1 = scmp.lt.u32.totalorder %s2227_s20, %s2644_s8 }
  0x7c   :  { %p2233_p2 = pnand %p2231_p1, %p2228_p0 }
  0x7e   :  { %2236 = shalt.err (!%p2233_p2)
}
  0x7f   :  { %s2237_s2 = scalar_lea.vmem %s112_s12, 16  ;;  %s2241_s27 = scalar_lea.vmem %s112_s12, 32 }
  0x80   :  { %p2238_p3 = scmp.ne.s32.totalorder %s112_s12, %s2237_s2  ;;  %p2242_p4 = scmp.lt.s32.totalorder %s112_s12, %s112_s12 }
  0x81   :  { %p2243_p5 = scmp.lt.s32.totalorder %s2241_s27, %s2237_s2 }
  0x83   :  { %p2244_p6 = por %p2243_p5, %p2242_p4 }
  0x85   :  { %p2245_p7 = pnand %p2244_p6, %p2238_p3 }
  0x87   :  { %2248 = shalt.err (!%p2245_p7)
}
  0x88   :  { %114 = dma.hbm_to_vmem [thread:$0]  %s2644_s8, 16, %s112_s12, [#allocation15]  }
  0x89   :  { %2271 = dma.done.wait [#allocation3], 512  }
  0x8a   :  { %2272 = vsyncadd [#allocation3], 4294966784 }
  0x8b   :  { %2273 = dma.done.wait [#allocation6], 4608  }
  0x8c   :  { %2274 = vsyncadd [#allocation6], 4294962688 }
  0x8d   :  { %2275 = dma.done.wait [#allocation9], 1056  }
  0x8e   :  { %2276 = vsyncadd [#allocation9], 4294966240 }
  0x8f   :  { %2277 = dma.done.wait [#allocation12], 4112  }
  0x90   :  { %2278 = vsyncadd [#allocation12], 4294963184 }
  0x91   :  { %2279 = dma.done.wait [#allocation15], 16  }
  0x92   :  { %2280 = vsyncadd [#allocation15], 4294967280  ;;  %v153_v0 = vld [vmem:[#allocation7] sm:$0xff]  ;;  %v154_v1 = vld [vmem:[#allocation7 + $0x8] sm:$0xff]  ;;  %v2295_v28 = vmov 0.0|0.0   ;;  %vm2296_vm0 = vmmov 0   ;;  %v348_v42 = vlaneseq }
  0x93   :  { %v155_v2 = vld [vmem:[#allocation7 + $0x10] sm:$0xff]  ;;  %v1811_v3 = vpack.c.bf16 %v154_v1, %v153_v0  ;;  %v156_v4 = vld [vmem:[#allocation7 + $0x18] sm:$0xff]  ;;  %v157_v6 = vld [vmem:[#allocation7 + $0x20] sm:$0xff]  ;;  %1843 = vmatprep.subr.bf16.mxu1 %v2295_v28  ;;  %v2297_v29 = vmov 0.0   ;;  %vm372_vm2 = vcmask 261120  }
  0x94   :  { %v1815_v5 = vpack.c.bf16 %v156_v4, %v155_v2  ;;  %v158_v7 = vld [vmem:[#allocation7 + $0x28] sm:$0xff]  ;;  %v2486_v9 = vld [vmem:[#allocation2] sm:$0xff]  ;;  %v159_v10 = vld [vmem:[#allocation7 + $0x30] sm:$0xff]  ;;  %1630 = vmatprep.mubr.msk.f32.mxu1 %vm2296_vm0, %v2297_v29  ;;  %v349_v43 = vshrl.u32 %v348_v42, 7 }
  0x95   :  { %1812 = vmatprep.subr.bf16.mxu0 %v1811_v3  ;;  %v1819_v8 = vpack.c.bf16 %v158_v7, %v157_v6  ;;  %v160_v11 = vld [vmem:[#allocation7 + $0x38] sm:$0xff]  ;;  %1616 = vmatprep.mubr.f32.mxu0 %v2486_v9  ;;  %v161_v13 = vld [vmem:[#allocation7 + $0x40] sm:$0xff]  ;;  %v162_v14 = vld [vmem:[#allocation7 + $0x48] sm:$0xff] }
  0x96   :  { %1814 = vmatpush3.bf16.msra.mxu0 %v1811_v3  ;;  %v1823_v12 = vpack.c.bf16 %v160_v11, %v159_v10  ;;  %v1827_v15 = vpack.c.bf16 %v162_v14, %v161_v13  ;;  %v163_v16 = vld [vmem:[#allocation7 + $0x50] sm:$0xff]  ;;  %v164_v17 = vld [vmem:[#allocation7 + $0x58] sm:$0xff]  ;;  %v165_v19 = vld [vmem:[#allocation7 + $0x60] sm:$0xff]  ;;  %v2505_v46 = vsub.s32 0, %v349_v43 }
  0x97   :  { %1816 = vmatprep.subr.bf16.mxu0 %v1815_v5  ;;  %v1831_v18 = vpack.c.bf16 %v164_v17, %v163_v16  ;;  %v166_v20 = vld [vmem:[#allocation7 + $0x68] sm:$0xff]  ;;  %v167_v22 = vld [vmem:[#allocation7 + $0x70] sm:$0xff]  ;;  %v168_v23 = vld [vmem:[#allocation7 + $0x78] sm:$0xff] }
  0x98   :  { %v1835_v21 = vpack.c.bf16 %v166_v20, %v165_v19  ;;  %v1839_v24 = vpack.c.bf16 %v168_v23, %v167_v22  ;;  %v2489_v25 = vld [vmem:[#allocation2 + $0x8] sm:$0xff]  ;;  %v2491_v26 = vld [vmem:[#allocation2 + $0x10] sm:$0xff]  ;;  %v2495_v27 = vld [vmem:[#allocation2 + $0x18] sm:$0xff] }
  0x99   :  { %v1437_v30 = vld [vmem:[%s2639_s3] ss:$0 sm:$0xff]  ;;  %v2508_v50 = vld [vmem:[#allocation5 + $0x8] sm:$0xff]  ;;  %v2514_v58 = vld [vmem:[#allocation5 + $0x18] sm:$0xff] }
  0x9a   :  { %1818 = vmatpush3.bf16.msra.mxu0 %v1815_v5  ;;  %v255_v41 = vld [vmem:[#allocation8] sm:$0x1]  ;;  %vm146_vm1 = vcmp.gt.f32.partialorder %v2508_v50, 0.0  ;;  %v2516_v59 = vld [vmem:[#allocation5 + $0x10] sm:$0xff]  ;;  %vm148_vm8 = vcmp.gt.f32.partialorder %v2514_v58, 0.0 }
  0x9b   :  { %1820 = vmatprep.subr.bf16.mxu0 %v1819_v8  ;;  %v2510_v51 = vld [vmem:[#allocation5] sm:$0xff]  ;;  %vm147_vm9 = vcmp.gt.f32.partialorder %v2516_v59, 0.0 }
  0x9c   :  { %vm145_vm3 = vcmp.gt.f32.partialorder %v2510_v51, 0.0 }
  0x9e   :  { %1822 = vmatpush3.bf16.msra.mxu0 %v1819_v8 }
  0x9f   :  { %1824 = vmatprep.subr.bf16.mxu0 %v1823_v12 }
  0xa2   :  { %1826 = vmatpush3.bf16.msra.mxu0 %v1823_v12 }
  0xa3   :  { %1828 = vmatprep.subr.bf16.mxu0 %v1827_v15 }
  0xa6   :  { %1830 = vmatpush3.bf16.msra.mxu0 %v1827_v15 }
  0xa7   :  { %1832 = vmatprep.subr.bf16.mxu0 %v1831_v18 }
  0xaa   :  { %1834 = vmatpush3.bf16.msra.mxu0 %v1831_v18 }
  0xab   :  { %1836 = vmatprep.subr.bf16.mxu0 %v1835_v21 }
  0xae   :  { %1838 = vmatpush3.bf16.msra.mxu0 %v1835_v21 }
  0xaf   :  { %1840 = vmatprep.subr.bf16.mxu0 %v1839_v24 }
  0xb2   :  { %1842 = vmatpush3.bf16.msra.mxu0 %v1839_v24 }
  0xb5   :  { %1617 = vmatmul.mubr.f32.vlgmr.msra.gmra.mrb[0].mxu0 %v2489_v25 }
  0xb6   :  { %1619 = vmatprep.mubr.f32.mxu0 %v2491_v26 }
  0xb9   :  { %1620 = vmatmul.mubr.f32.gmra.mrb[2].mxu0 %v2495_v27 }
 0x188   :  { %v1618_v31 = vpop.f32.mrb[0].mxu0 }
 0x189   :  { %v235_v32 = vpop.f32.mrb[1].mxu0  ;;  %v267_v38 = vmul.f32 %v1618_v31, %v1437_v30 }
 0x18a   :  { %v1844_v33 = vpack.c.bf16 %v1618_v31, %v235_v32  ;;  %v266_v34 = vmul.f32 %v1437_v30, %v235_v32 }
 0x18c   :  { %1845 = vmatpush3.bf16.xpose.msra.mxu1 %v1844_v33  ;;  %270 = vadd.xlane.f32.xlu0 %v266_v34  ;;  %v1621_v35 = vpop.f32.mrb[2].mxu0 }
 0x18d   :  { %v245_v36 = vpop.f32.mrb[3].mxu0  ;;  %1846 = vmatprep.subr.bf16.mxu1 %v2295_v28  ;;  %v269_v40 = vmul.f32 %v1621_v35, %v1437_v30 }
 0x18e   :  { %v1847_v37 = vpack.c.bf16 %v1621_v35, %v245_v36  ;;  %v268_v39 = vmul.f32 %v1437_v30, %v245_v36 }
 0x190   :  { %272 = vadd.xlane.f32.xlu0 %v267_v38  ;;  %274 = vadd.xlane.f32.xlu1 %v268_v39  ;;  %v555_v38 = vld [vmem:[#allocation7 + $0x80] sm:$0xff]  ;;  %v556_v39 = vld [vmem:[#allocation7 + $0x88] sm:$0xff] }
 0x194   :  { %1848 = vmatpush3.bf16.xpose.msra.mxu1 %v1847_v37  ;;  %276 = vadd.xlane.f32.xlu1 %v269_v40  ;;  %v1857_v40 = vpack.c.bf16 %v556_v39, %v555_v38 }
 0x195   :  { %1850 = vmatprep.subr.bf16.mxu1 %v1844_v33 }
 0x19b   :  { %1631 = vmatmul.mubr.f32.vlgmr.msra.gmra.mrb[0].mxu1 %v255_v41 }
 0x19c   :  { %1852 = vmatpush3.bf16.msra.mxu1 %v1844_v33 }
 0x19d   :  { %1854 = vmatprep.subr.bf16.mxu1 %v1847_v37 }
 0x1a0   :  { %1856 = vmatpush3.bf16.msra.mxu1 %v1847_v37 }
 0x1a1   :  { %1858 = vmatprep.subr.bf16.mxu1 %v1857_v40 }
 0x219   :  { %v271_v44 = vpop.xlane.xlu0 %270 }
 0x21d   :  { %v275_v45 = vpop.xlane.xlu1 %274  ;;  %v273_v52 = vpop.xlane.xlu0 %272 }
 0x221   :  { %v277_v53 = vpop.xlane.xlu1 %276 }
 0x26e   :  { %v344_v47 = vpop.f32.mrb[0].mxu1 }
 0x26f   :  { %v351_v48 = vrot.slane %v344_v47, %v2505_v46  ;;  %v1632_v49 = vpop.f32.mrb[1].mxu1  ;;  %v557_v47 = vld [vmem:[#allocation7 + $0x90] sm:$0xff] }
 0x271   :  { %v353_v54 = vadd.f32 %v351_v48, %v273_v52  ;;  %v352_v55 = vadd.f32 %v351_v48, %v271_v44  ;;  %v355_v56 = vadd.f32 %v351_v48, %v277_v53  ;;  %v354_v57 = vadd.f32 %v351_v48, %v275_v45  ;;  %v558_v48 = vld [vmem:[#allocation7 + $0x98] sm:$0xff] }
 0x273   :  { %vm357_vm4 = vcmp.gt.f32.partialorder %v353_v54, 0.0  ;;  %v361_v60 = vmul.f32 0.2, %v353_v54  ;;  %vm356_vm5 = vcmp.gt.f32.partialorder %v352_v55, 0.0  ;;  %v360_v61 = vmul.f32 0.2, %v352_v55 }
 0x274   :  { %vm359_vm6 = vcmp.gt.f32.partialorder %v355_v56, 0.0  ;;  %v363_v62 = vmul.f32 0.2, %v355_v56  ;;  %vm358_vm7 = vcmp.gt.f32.partialorder %v354_v57, 0.0  ;;  %v362_v63 = vmul.f32 0.2, %v354_v57 }
 0x275   :  { %v365_v0 = vsel %vm357_vm4, %v353_v54, %v361_v60  ;;  %v364_v1 = vsel %vm356_vm5, %v352_v55, %v360_v61  ;;  %v1861_v54 = vpack.c.bf16 %v558_v48, %v557_v47 }
 0x276   :  { %v369_v2 = vsel %vm146_vm1, %v365_v0, -1e+10  ;;  %v368_v3 = vsel %vm145_vm3, %v364_v1, -1e+10  ;;  %v367_v4 = vsel %vm359_vm6, %v355_v56, %v363_v62  ;;  %v366_v5 = vsel %vm358_vm7, %v354_v57, %v362_v63  ;;  %v559_v56 = vld [vmem:[#allocation7 + $0xa0] sm:$0xff]  ;;  %v560_v57 = vld [vmem:[#allocation7 + $0xa8] sm:$0xff] }
 0x277   :  { %v376_v6 = vsel %vm372_vm2, %v369_v2, -inf  ;;  %v373_v7 = vsel %vm372_vm2, %v368_v3, -inf  ;;  %v371_v8 = vsel %vm148_vm8, %v367_v4, -1e+10  ;;  %v370_v10 = vsel %vm147_vm9, %v366_v5, -1e+10 }
 0x278   :  { %377 = vmax.xlane.f32.xlu1 %v376_v6  ;;  %374 = vmax.xlane.f32.xlu0 %v373_v7  ;;  %v382_v11 = vsel %vm372_vm2, %v371_v8, -inf  ;;  %v379_v12 = vsel %vm372_vm2, %v370_v10, -inf  ;;  %v1865_v63 = vpack.c.bf16 %v560_v57, %v559_v56  ;;  %v561_v0 = vld [vmem:[#allocation7 + $0xb0] sm:$0xff]  ;;  %v562_v1 = vld [vmem:[#allocation7 + $0xb8] sm:$0xff]  ;;  %v564_v4 = vld [vmem:[#allocation7 + $0xc8] sm:$0xff] }
 0x279   :  { %v565_v6 = vld [vmem:[#allocation7 + $0xd0] sm:$0xff]  ;;  %v566_v7 = vld [vmem:[#allocation7 + $0xd8] sm:$0xff] }
 0x27c   :  { %383 = vmax.xlane.f32.xlu1 %v382_v11  ;;  %380 = vmax.xlane.f32.xlu0 %v379_v12  ;;  %v568_v11 = vld [vmem:[#allocation7 + $0xe8] sm:$0xff] }
 0x305   :  { %v378_v13 = vpop.xlane.xlu1 %377  ;;  %v375_v14 = vpop.xlane.xlu0 %374 }
 0x306   :  { %v386_v15 = vsub.f32 %v369_v2, %v378_v13  ;;  %v385_v16 = vsub.f32 %v368_v3, %v375_v14  ;;  %v1869_v2 = vpack.c.bf16 %v562_v1, %v561_v0  ;;  %v563_v3 = vld [vmem:[#allocation7 + $0xc0] sm:$0xff]  ;;  %v569_v13 = vld [vmem:[#allocation7 + $0xf0] sm:$0xff]  ;;  %v570_v14 = vld [vmem:[#allocation7 + $0xf8] sm:$0xff] }
 0x307   :  { %v1873_v5 = vpack.c.bf16 %v564_v4, %v563_v3 }
 0x308   :  { %v391_v17 = vmul.f32 1.442695, %v386_v15  ;;  %v389_v18 = vmul.f32 1.442695, %v385_v16 }
 0x309   :  { %v384_v19 = vpop.xlane.xlu1 %383  ;;  %v381_v20 = vpop.xlane.xlu0 %380 }
 0x30a   :  { %2001 = vpow2.f32 %v391_v17  ;;  %v388_v21 = vsub.f32 %v371_v8, %v384_v19  ;;  %v387_v22 = vsub.f32 %v370_v10, %v381_v20  ;;  %v1877_v8 = vpack.c.bf16 %v566_v7, %v565_v6  ;;  %v567_v10 = vld [vmem:[#allocation7 + $0xe0] sm:$0xff] }
 0x30b   :  { %2003 = vpow2.f32 %v389_v18  ;;  %v1881_v12 = vpack.c.bf16 %v568_v11, %v567_v10  ;;  %v1447_v19 = vld [vmem:[%s2639_s3 + $0x1] ss:$0 sm:$0xff] }
 0x30c   :  { %v395_v23 = vmul.f32 1.442695, %v388_v21  ;;  %v393_v24 = vmul.f32 1.442695, %v387_v22 }
 0x30e   :  { %2005 = vpow2.f32 %v395_v23 }
 0x30f   :  { %2007 = vpow2.f32 %v393_v24 }
 0x314   :  { %v2002_v30 = vpop.eup %2001 }
 0x315   :  { %v2004_v31 = vpop.eup %2003  ;;  %v400_v32 = vsel %vm372_vm2, %v2002_v30, 0.0 }
 0x316   :  { %401 = vadd.xlane.f32.xlu1 %v400_v32  ;;  %v397_v33 = vsel %vm372_vm2, %v2004_v31, 0.0  ;;  %v659_v32 = vld [vmem:[#allocation8 + $0x1] sm:$0x1] }
 0x317   :  { %398 = vadd.xlane.f32.xlu0 %v397_v33 }
 0x318   :  { %v2006_v34 = vpop.eup %2005 }
 0x319   :  { %v2008_v35 = vpop.eup %2007  ;;  %v406_v36 = vsel %vm372_vm2, %v2006_v34, 0.0 }
 0x31a   :  { %407 = vadd.xlane.f32.xlu1 %v406_v36  ;;  %v403_v37 = vsel %vm372_vm2, %v2008_v35, 0.0 }
 0x31b   :  { %404 = vadd.xlane.f32.xlu0 %v403_v37 }
 0x3a3   :  { %v402_v41 = vpop.xlane.xlu1 %401 }
 0x3a4   :  { %2009 = vrcp.f32 %v402_v41  ;;  %v399_v42 = vpop.xlane.xlu0 %398 }
 0x3a5   :  { %2011 = vrcp.f32 %v399_v42 }
 0x3a7   :  { %v408_v43 = vpop.xlane.xlu1 %407 }
 0x3a8   :  { %2013 = vrcp.f32 %v408_v43  ;;  %v405_v44 = vpop.xlane.xlu0 %404 }
 0x3a9   :  { %2015 = vrcp.f32 %v405_v44 }
 0x3ae   :  { %v2010_v45 = vpop.eup %2009 }
 0x3af   :  { %v2012_v49 = vpop.eup %2011  ;;  %v414_v52 = vmul.f32 %v2010_v45, %v2002_v30 }
 0x3b0   :  { %v413_v53 = vmul.f32 %v2012_v49, %v2004_v31 }
 0x3b2   :  { %v2014_v55 = vpop.eup %2013  ;;  %1641 = vmatprep.mubr.msk.f32.mxu1 %vm372_vm2, %v413_v53 }
 0x3b3   :  { %v2016_v60 = vpop.eup %2015  ;;  %1642 = vmatmul.mubr.msk.f32.vlgmr.msra.gmra.mrb[2].mxu1 %vm372_vm2, %v414_v52  ;;  %v416_v61 = vmul.f32 %v2014_v55, %v2006_v34 }
 0x3b4   :  { %1860 = vmatpush3.bf16.msra.mxu1 %v1857_v40  ;;  %v415_v62 = vmul.f32 %v2016_v60, %v2008_v35 }
 0x3b5   :  { %1862 = vmatprep.subr.bf16.mxu1 %v1861_v54 }
 0x3b6   :  { %1644 = vmatprep.mubr.msk.f32.mxu1 %vm372_vm2, %v415_v62 }
 0x3b7   :  { %1645 = vmatmul.mubr.msk.f32.gmra.mrb[4].mxu1 %vm372_vm2, %v416_v61 }
 0x3b8   :  { %1864 = vmatpush3.bf16.msra.mxu1 %v1861_v54  ;;  %1679 = vmatprep.mubr.f32.mxu1 %v2486_v9  ;;  %v1885_v9 = vpack.c.bf16 %v570_v14, %v569_v13 }
 0x3b9   :  { %1866 = vmatprep.subr.bf16.mxu1 %v1865_v63 }
 0x3bc   :  { %1868 = vmatpush3.bf16.msra.mxu1 %v1865_v63 }
 0x3bd   :  { %1870 = vmatprep.subr.bf16.mxu1 %v1869_v2 }
 0x3c0   :  { %1872 = vmatpush3.bf16.msra.mxu1 %v1869_v2 }
 0x3c1   :  { %1874 = vmatprep.subr.bf16.mxu1 %v1873_v5 }
 0x3c4   :  { %1876 = vmatpush3.bf16.msra.mxu1 %v1873_v5 }
 0x3c5   :  { %1878 = vmatprep.subr.bf16.mxu1 %v1877_v8 }
 0x3c8   :  { %1880 = vmatpush3.bf16.msra.mxu1 %v1877_v8 }
 0x3c9   :  { %1882 = vmatprep.subr.bf16.mxu1 %v1881_v12 }
 0x3cc   :  { %1884 = vmatpush3.bf16.msra.mxu1 %v1881_v12 }
 0x3cd   :  { %1886 = vmatprep.subr.bf16.mxu1 %v1885_v9 }
 0x3d0   :  { %1888 = vmatpush3.bf16.msra.mxu1 %v1885_v9 }
 0x3d1   :  { %1889 = vmatprep.subr.bf16.mxu1 %v2295_v28 }
 0x3d3   :  { %1680 = vmatmul.mubr.f32.vlgmr.msra.gmra.mrb[6].mxu1 %v2489_v25 }
 0x3d4   :  { %1682 = vmatprep.mubr.f32.mxu1 %v2491_v26 }
 0x3d7   :  { %1683 = vmatmul.mubr.f32.gmra.mrb[8].mxu1 %v2495_v27 }
 0x3d8   :  { %1693 = vmatprep.mubr.msk.f32.mxu1 %vm2296_vm0, %v2297_v29 }
 0x486   :  { %v2547_v15 = vpop.f32.mrb[2].mxu1 }
 0x487   :  { %v2549_v16 = vpop.f32.mrb[3].mxu1 }
 0x48a   :  { %v2551_v17 = vpop.f32.mrb[4].mxu1 }
 0x48b   :  { %v2553_v18 = vpop.f32.mrb[5].mxu1 }
 0x4a6   :  { %v1681_v25 = vpop.f32.mrb[6].mxu1 }
 0x4a7   :  { %v637_v20 = vpop.f32.mrb[7].mxu1  ;;  %v672_v26 = vmul.f32 %v1681_v25, %v1447_v19 }
 0x4a8   :  { %v1890_v21 = vpack.c.bf16 %v1681_v25, %v637_v20  ;;  %v671_v27 = vmul.f32 %v1447_v19, %v637_v20 }
 0x4a9   :  { %677 = vadd.xlane.f32.xlu1 %v672_v26 }
 0x4aa   :  { %1891 = vmatpush3.bf16.xpose.msra.mxu1 %v1890_v21  ;;  %1896 = vmatprep.subr.bf16.mxu0 %v1890_v21  ;;  %v1684_v22 = vpop.f32.mrb[8].mxu1 }
 0x4ab   :  { %675 = vadd.xlane.f32.xlu0 %v671_v27  ;;  %1898 = vmatpush3.bf16.msra.mxu0 %v1890_v21  ;;  %v647_v23 = vpop.f32.mrb[9].mxu1  ;;  %v674_v24 = vmul.f32 %v1684_v22, %v1447_v19  ;;  %v943_v27 = vld [vmem:[#allocation11 + $0x80] sm:$0xff] }
 0x4ac   :  { %v1893_v30 = vpack.c.bf16 %v1684_v22, %v647_v23  ;;  %1892 = vmatprep.subr.bf16.mxu1 %v2295_v28  ;;  %v673_v31 = vmul.f32 %v1447_v19, %v647_v23  ;;  %v944_v22 = vld [vmem:[#allocation11 + $0x88] sm:$0xff] }
 0x4ad   :  { %681 = vadd.xlane.f32.xlu1 %v674_v24  ;;  %v1903_v23 = vpack.c.bf16 %v944_v22, %v943_v27 }
 0x4ae   :  { %1900 = vmatprep.subr.bf16.mxu0 %v1893_v30 }
 0x4af   :  { %1902 = vmatpush3.bf16.msra.mxu0 %v1893_v30  ;;  %679 = vadd.xlane.f32.xlu0 %v673_v31 }
 0x4b0   :  { %1904 = vmatprep.subr.bf16.mxu0 %v1903_v23 }
 0x4b2   :  { %1894 = vmatpush3.bf16.xpose.msra.mxu1 %v1893_v30 }
 0x4b3   :  { %1967 = vmatprep.subr.bf16.mxu1 %v2295_v28 }
 0x4b9   :  { %1694 = vmatmul.mubr.f32.vlgmr.msra.gmra.mrb[10].mxu1 %v659_v32 }
 0x4ba   :  { %1794 = vmatprep.mubr.msk.f32.mxu1 %vm2296_vm0, %v2297_v29 }
 0x536   :  { %v678_v33 = vpop.xlane.xlu1 %677 }
 0x538   :  { %v676_v34 = vpop.xlane.xlu0 %675 }
 0x53a   :  { %v682_v38 = vpop.xlane.xlu1 %681 }
 0x53c   :  { %v680_v39 = vpop.xlane.xlu0 %679 }
 0x58c   :  { %v749_v35 = vpop.f32.mrb[10].mxu1 }
 0x58d   :  { %v756_v36 = vrot.slane %v749_v35, %v2505_v46  ;;  %v1695_v37 = vpop.f32.mrb[11].mxu1  ;;  %v946_v35 = vld [vmem:[#allocation11 + $0x98] sm:$0xff] }
 0x58f   :  { %v758_v40 = vadd.f32 %v756_v36, %v678_v33  ;;  %v757_v41 = vadd.f32 %v756_v36, %v676_v34  ;;  %v760_v42 = vadd.f32 %v756_v36, %v682_v38  ;;  %v759_v43 = vadd.f32 %v756_v36, %v680_v39  ;;  %v945_v34 = vld [vmem:[#allocation11 + $0x90] sm:$0xff] }
 0x590   :  { %v1907_v39 = vpack.c.bf16 %v946_v35, %v945_v34 }
 0x591   :  { %vm762_vm10 = vcmp.gt.f32.partialorder %v758_v40, 0.0  ;;  %v766_v44 = vmul.f32 0.2, %v758_v40  ;;  %vm761_vm11 = vcmp.gt.f32.partialorder %v757_v41, 0.0  ;;  %v765_v45 = vmul.f32 0.2, %v757_v41 }
 0x592   :  { %vm764_vm12 = vcmp.gt.f32.partialorder %v760_v42, 0.0  ;;  %v768_v47 = vmul.f32 0.2, %v760_v42  ;;  %vm763_vm13 = vcmp.gt.f32.partialorder %v759_v43, 0.0  ;;  %v767_v29 = vmul.f32 0.2, %v759_v43 }
 0x593   :  { %v770_v48 = vsel %vm762_vm10, %v758_v40, %v766_v44  ;;  %v769_v49 = vsel %vm761_vm11, %v757_v41, %v765_v45  ;;  %v947_v41 = vld [vmem:[#allocation11 + $0xa0] sm:$0xff] }
 0x594   :  { %v774_v52 = vsel %vm146_vm1, %v770_v48, -1e+10  ;;  %v773_v53 = vsel %vm145_vm3, %v769_v49, -1e+10  ;;  %v772_v54 = vsel %vm764_vm12, %v760_v42, %v768_v47  ;;  %v771_v55 = vsel %vm763_vm13, %v759_v43, %v767_v29  ;;  %v948_v42 = vld [vmem:[#allocation11 + $0xa8] sm:$0xff]  ;;  %v949_v29 = vld [vmem:[#allocation11 + $0xb0] sm:$0xff] }
 0x595   :  { %v780_v56 = vsel %vm372_vm2, %v774_v52, -inf  ;;  %v777_v57 = vsel %vm372_vm2, %v773_v53, -inf  ;;  %v776_v60 = vsel %vm148_vm8, %v772_v54, -1e+10  ;;  %v775_v61 = vsel %vm147_vm9, %v771_v55, -1e+10 }
 0x596   :  { %781 = vmax.xlane.f32.xlu1 %v780_v56  ;;  %778 = vmax.xlane.f32.xlu0 %v777_v57  ;;  %v786_v62 = vsel %vm372_vm2, %v776_v60, -inf  ;;  %v783_v63 = vsel %vm372_vm2, %v775_v61, -inf  ;;  %v1911_v47 = vpack.c.bf16 %v948_v42, %v947_v41  ;;  %v950_v48 = vld [vmem:[#allocation11 + $0xb8] sm:$0xff]  ;;  %v953_v55 = vld [vmem:[#allocation11 + $0xd0] sm:$0xff] }
 0x597   :  { %v1915_v49 = vpack.c.bf16 %v950_v48, %v949_v29  ;;  %v954_v56 = vld [vmem:[#allocation11 + $0xd8] sm:$0xff]  ;;  %v542_v48 = vld [vmem:[#allocation11 + $0x20] sm:$0xff] }
 0x598   :  { %v1923_v57 = vpack.c.bf16 %v954_v56, %v953_v55 }
 0x59a   :  { %787 = vmax.xlane.f32.xlu1 %v786_v62  ;;  %784 = vmax.xlane.f32.xlu0 %v783_v63  ;;  %v957_v63 = vld [vmem:[#allocation11 + $0xf0] sm:$0xff] }
 0x623   :  { %v782_v0 = vpop.xlane.xlu1 %781  ;;  %v779_v1 = vpop.xlane.xlu0 %778 }
 0x624   :  { %v790_v2 = vsub.f32 %v774_v52, %v782_v0  ;;  %v789_v3 = vsub.f32 %v773_v53, %v779_v1  ;;  %v951_v52 = vld [vmem:[#allocation11 + $0xc0] sm:$0xff]  ;;  %v952_v53 = vld [vmem:[#allocation11 + $0xc8] sm:$0xff]  ;;  %v958_v0 = vld [vmem:[#allocation11 + $0xf8] sm:$0xff] }
 0x625   :  { %v1919_v54 = vpack.c.bf16 %v952_v53, %v951_v52  ;;  %v1931_v1 = vpack.c.bf16 %v958_v0, %v957_v63  ;;  %v258_v52 = vld [vmem:[#allocation10 + $0x10] sm:$0xff]  ;;  %v545_v0 = vld [vmem:[#allocation11 + $0x38] sm:$0xff] }
 0x626   :  { %v795_v4 = vmul.f32 1.442695, %v790_v2  ;;  %v793_v5 = vmul.f32 1.442695, %v789_v3  ;;  %v538_v2 = vld [vmem:[#allocation11] sm:$0xff]  ;;  %v539_v3 = vld [vmem:[#allocation11 + $0x8] sm:$0xff] }
 0x627   :  { %v788_v6 = vpop.xlane.xlu1 %787  ;;  %v785_v7 = vpop.xlane.xlu0 %784  ;;  %v544_v63 = vld [vmem:[#allocation11 + $0x30] sm:$0xff] }
 0x628   :  { %2017 = vpow2.f32 %v795_v4  ;;  %v792_v8 = vsub.f32 %v776_v60, %v788_v6  ;;  %v791_v10 = vsub.f32 %v775_v61, %v785_v7  ;;  %v955_v60 = vld [vmem:[#allocation11 + $0xe0] sm:$0xff]  ;;  %v956_v61 = vld [vmem:[#allocation11 + $0xe8] sm:$0xff]  ;;  %v1935_v4 = vpack.c.bf16 %v539_v3, %v538_v2 }
 0x629   :  { %2019 = vpow2.f32 %v793_v5  ;;  %v1927_v62 = vpack.c.bf16 %v956_v61, %v955_v60  ;;  %v256_v5 = vld [vmem:[#allocation10] sm:$0xff]  ;;  %v662_v7 = vld [vmem:[#allocation10 + $0x28] sm:$0xff]  ;;  %v259_v60 = vld [vmem:[#allocation10 + $0x18] sm:$0xff]  ;;  %v506_v61 = vadd.f32 %v2553_v18, %v258_v52 }
 0x62a   :  { %v799_v11 = vmul.f32 1.442695, %v792_v8  ;;  %v797_v12 = vmul.f32 1.442695, %v791_v10  ;;  %v496_v6 = vadd.f32 %v2549_v16, %v256_v5  ;;  %v661_v8 = vld [vmem:[#allocation10 + $0x20] sm:$0xff]  ;;  %v511_v3 = vadd.f32 %v2551_v17, %v259_v60 }
 0x62b   :  { %v546_v5 = vld [vmem:[#allocation11 + $0x40] sm:$0xff] }
 0x62c   :  { %2021 = vpow2.f32 %v799_v11  ;;  %v517_v18 = vmul.f32 1e-05, %v511_v3  ;;  %v550_v17 = vld [vmem:[#allocation11 + $0x60] sm:$0xff] }
 0x62d   :  { %2023 = vpow2.f32 %v797_v12 }
 0x62e   :  { %vm521_vm10 = vcmp.gt.f32.partialorder %v517_v18, 0.0 }
 0x632   :  { %v2018_v13 = vpop.eup %2017 }
 0x633   :  { %v2020_v14 = vpop.eup %2019  ;;  %v804_v9 = vsel %vm372_vm2, %v2018_v13, 0.0 }
 0x634   :  { %805 = vadd.xlane.f32.xlu1 %v804_v9  ;;  %v801_v19 = vsel %vm372_vm2, %v2020_v14, 0.0  ;;  %v664_v9 = vld [vmem:[#allocation10 + $0x38] sm:$0xff] }
 0x635   :  { %802 = vadd.xlane.f32.xlu0 %v801_v19 }
 0x636   :  { %v2022_v25 = vpop.eup %2021 }
 0x637   :  { %v2024_v20 = vpop.eup %2023  ;;  %v810_v26 = vsel %vm372_vm2, %v2022_v25, 0.0 }
 0x638   :  { %811 = vadd.xlane.f32.xlu1 %v810_v26  ;;  %v807_v21 = vsel %vm372_vm2, %v2024_v20, 0.0 }
 0x639   :  { %808 = vadd.xlane.f32.xlu0 %v807_v21 }
 0x6c1   :  { %v806_v24 = vpop.xlane.xlu1 %805 }
 0x6c2   :  { %2025 = vrcp.f32 %v806_v24  ;;  %v803_v30 = vpop.xlane.xlu0 %802 }
 0x6c3   :  { %2027 = vrcp.f32 %v803_v30 }
 0x6c5   :  { %v812_v31 = vpop.xlane.xlu1 %811 }
 0x6c6   :  { %2029 = vrcp.f32 %v812_v31  ;;  %v809_v32 = vpop.xlane.xlu0 %808 }
 0x6c7   :  { %2031 = vrcp.f32 %v809_v32 }
 0x6cc   :  { %v2026_v33 = vpop.eup %2025 }
 0x6cd   :  { %v2028_v36 = vpop.eup %2027  ;;  %v818_v37 = vmul.f32 %v2026_v33, %v2018_v13  ;;  %v514_v13 = vmul.f32 1e-05, %v496_v6  ;;  %v547_v6 = vld [vmem:[#allocation11 + $0x48] sm:$0xff] }
 0x6ce   :  { %v817_v38 = vmul.f32 %v2028_v36, %v2020_v14 }
 0x6cf   :  { %vm518_vm5 = vcmp.gt.f32.partialorder %v514_v13, 0.0 }
 0x6d0   :  { %v2030_v40 = vpop.eup %2029  ;;  %1704 = vmatprep.mubr.msk.f32.mxu0 %vm372_vm2, %v817_v38  ;;  %v541_v38 = vld [vmem:[#allocation11 + $0x18] sm:$0xff] }
 0x6d1   :  { %v2032_v43 = vpop.eup %2031  ;;  %1705 = vmatmul.mubr.msk.f32.vlgmr.msra.gmra.mrb[4].mxu0 %vm372_vm2, %v818_v37  ;;  %v820_v44 = vmul.f32 %v2030_v40, %v2022_v25  ;;  %v663_v25 = vld [vmem:[#allocation10 + $0x30] sm:$0xff] }
 0x6d2   :  { %v819_v45 = vmul.f32 %v2032_v43, %v2024_v20  ;;  %1906 = vmatpush3.bf16.msra.mxu0 %v1903_v23  ;;  %v522_v23 = vmul.f32 1.442695, %v514_v13  ;;  %v540_v37 = vld [vmem:[#allocation11 + $0x10] sm:$0xff] }
 0x6d3   :  { %1908 = vmatprep.subr.bf16.mxu0 %v1907_v39  ;;  %v1939_v43 = vpack.c.bf16 %v541_v38, %v540_v37 }
 0x6d4   :  { %1707 = vmatprep.mubr.msk.f32.mxu0 %vm372_vm2, %v819_v45  ;;  %v257_v45 = vld [vmem:[#allocation10 + $0x8] sm:$0xff] }
 0x6d5   :  { %1708 = vmatmul.mubr.msk.f32.gmra.mrb[6].mxu0 %vm372_vm2, %v820_v44  ;;  %v501_v55 = vadd.f32 %v2547_v15, %v257_v45  ;;  %v1947_v15 = vpack.c.bf16 %v545_v0, %v544_v63 }
 0x6d6   :  { %1910 = vmatpush3.bf16.msra.mxu0 %v1907_v39 }
 0x6d7   :  { %1912 = vmatprep.subr.bf16.mxu0 %v1911_v47  ;;  %v515_v2 = vmul.f32 1e-05, %v501_v55 }
 0x6d9   :  { %vm519_vm6 = vcmp.gt.f32.partialorder %v515_v2, 0.0 }
 0x6da   :  { %1914 = vmatpush3.bf16.msra.mxu0 %v1911_v47 }
 0x6db   :  { %1916 = vmatprep.subr.bf16.mxu0 %v1915_v49 }
 0x6de   :  { %1918 = vmatpush3.bf16.msra.mxu0 %v1915_v49  ;;  %v543_v49 = vld [vmem:[#allocation11 + $0x28] sm:$0xff] }
 0x6df   :  { %1920 = vmatprep.subr.bf16.mxu0 %v1919_v54 }
 0x6e2   :  { %1922 = vmatpush3.bf16.msra.mxu0 %v1919_v54 }
 0x6e3   :  { %1924 = vmatprep.subr.bf16.mxu0 %v1923_v57 }
 0x6e6   :  { %1926 = vmatpush3.bf16.msra.mxu0 %v1923_v57  ;;  %v1943_v57 = vpack.c.bf16 %v543_v49, %v542_v48 }
 0x6e7   :  { %1928 = vmatprep.subr.bf16.mxu0 %v1927_v62 }
 0x6ea   :  { %1930 = vmatpush3.bf16.msra.mxu0 %v1927_v62 }
 0x6eb   :  { %1932 = vmatprep.subr.bf16.mxu0 %v1931_v1 }
 0x6ee   :  { %1934 = vmatpush3.bf16.msra.mxu0 %v1931_v1 }
 0x6ef   :  { %1936 = vmatprep.subr.bf16.mxu0 %v1935_v4 }
 0x7a4   :  { %v1706_v10 = vpop.f32.mrb[4].mxu0 }
 0x7a5   :  { %v905_v11 = vadd.f32 %v1706_v10, %v662_v7  ;;  %v899_v12 = vpop.f32.mrb[5].mxu0  ;;  %v524_v7 = vmul.f32 1.442695, %v515_v2 }
 0x7a6   :  { %v900_v14 = vadd.f32 %v899_v12, %v661_v8  ;;  %v1951_v8 = vpack.c.bf16 %v547_v6, %v546_v5  ;;  %v549_v12 = vld [vmem:[#allocation11 + $0x58] sm:$0xff] }
 0x7a7   :  { %v919_v19 = vmul.f32 1e-05, %v905_v11  ;;  %v548_v11 = vld [vmem:[#allocation11 + $0x50] sm:$0xff] }
 0x7a8   :  { %v918_v20 = vmul.f32 1e-05, %v900_v14  ;;  %v1709_v26 = vpop.f32.mrb[6].mxu0  ;;  %v1955_v14 = vpack.c.bf16 %v549_v12, %v548_v11 }
 0x7a9   :  { %v928_v21 = vmul.f32 1.442695, %v919_v19  ;;  %v915_v27 = vadd.f32 %v1709_v26, %v664_v9  ;;  %v909_v22 = vpop.f32.mrb[7].mxu0  ;;  %vm923_vm15 = vcmp.gt.f32.partialorder %v919_v19, 0.0  ;;  %v551_v9 = vld [vmem:[#allocation11 + $0x68] sm:$0xff] }
 0x7aa   :  { %v926_v24 = vmul.f32 1.442695, %v918_v20  ;;  %v910_v30 = vadd.f32 %v909_v22, %v663_v25  ;;  %vm922_vm14 = vcmp.gt.f32.partialorder %v918_v20, 0.0  ;;  %v552_v25 = vld [vmem:[#allocation11 + $0x70] sm:$0xff] }
 0x7ab   :  { %2033 = vpow2.f32 %v928_v21  ;;  %v921_v16 = vmul.f32 1e-05, %v915_v27 }
 0x7ac   :  { %2035 = vpow2.f32 %v926_v24  ;;  %v920_v31 = vmul.f32 1e-05, %v910_v30 }
 0x7ad   :  { %v932_v32 = vmul.f32 1.442695, %v921_v16  ;;  %2037 = vpow2.f32 %v522_v23  ;;  %vm925_vm4 = vcmp.gt.f32.partialorder %v921_v16, 0.0 }
 0x7ae   :  { %v930_v33 = vmul.f32 1.442695, %v920_v31  ;;  %vm924_vm0 = vcmp.gt.f32.partialorder %v920_v31, 0.0 }
 0x7af   :  { %2039 = vpow2.f32 %v932_v32 }
 0x7b0   :  { %2041 = vpow2.f32 %v930_v33  ;;  %v1456_v33 = vld [vmem:[#allocation13] ss:$0 sm:$0xff] }
 0x7b1   :  { %2043 = vpow2.f32 %v524_v7 }
 0x7b5   :  { %v2034_v34 = vpop.eup %2033 }
 0x7b6   :  { %v2036_v35 = vpop.eup %2035  ;;  %v1453_v36 = vadd.f32 -1.0, %v2034_v34 }
 0x7b7   :  { %v1452_v39 = vadd.f32 -1.0, %v2036_v35  ;;  %v2038_v40 = vpop.eup %2037 }
 0x7b8   :  { %v939_v47 = vsel %vm923_vm15, %v919_v19, %v1453_v36  ;;  %v1442_v54 = vadd.f32 -1.0, %v2038_v40  ;;  %v1959_v19 = vpack.c.bf16 %v551_v9, %v550_v17 }
 0x7b9   :  { %v2040_v41 = vpop.eup %2039  ;;  %v938_v42 = vsel %vm922_vm14, %v918_v20, %v1452_v39  ;;  %v553_v20 = vld [vmem:[#allocation11 + $0x78] sm:$0xff] }
 0x7ba   :  { %v2042_v44 = vpop.eup %2041  ;;  %1742 = vmatprep.mubr.f32.mxu0 %v938_v42  ;;  %v1455_v29 = vadd.f32 -1.0, %v2040_v41  ;;  %v534_v1 = vsel %vm518_vm5, %v514_v13, %v1442_v54  ;;  %v528_v13 = vmul.f32 1.442695, %v517_v18  ;;  %v1963_v26 = vpack.c.bf16 %v553_v20, %v552_v25 }
 0x7bb   :  { %1743 = vmatmul.mubr.f32.vlgmr.msra.gmra.mrb[8].mxu0 %v939_v47  ;;  %v1454_v53 = vadd.f32 -1.0, %v2042_v44  ;;  %v2044_v21 = vpop.eup %2043  ;;  %v1130_v44 = vld [vmem:[#allocation14] sm:$0x1] }
 0x7bc   :  { %1938 = vmatpush3.bf16.msra.mxu0 %v1935_v4  ;;  %v941_v62 = vsel %vm925_vm4, %v921_v16, %v1455_v29  ;;  %v516_v4 = vmul.f32 1e-05, %v506_v61  ;;  %v1443_v22 = vadd.f32 -1.0, %v2044_v21 }
 0x7bd   :  { %v940_v56 = vsel %vm924_vm0, %v920_v31, %v1454_v53  ;;  %1940 = vmatprep.subr.bf16.mxu0 %v1939_v43 }
 0x7be   :  { %1745 = vmatprep.mubr.f32.mxu0 %v940_v56  ;;  %v526_v10 = vmul.f32 1.442695, %v516_v4  ;;  %v535_v30 = vsel %vm519_vm6, %v515_v2, %v1443_v22  ;;  %vm520_vm7 = vcmp.gt.f32.partialorder %v516_v4, 0.0 }
 0x7bf   :  { %1746 = vmatmul.mubr.f32.gmra.mrb[10].mxu0 %v941_v62 }
 0x7c0   :  { %1942 = vmatpush3.bf16.msra.mxu0 %v1939_v43  ;;  %1780 = vmatprep.mubr.f32.mxu0 %v534_v1  ;;  %2045 = vpow2.f32 %v526_v10 }
 0x7c1   :  { %1944 = vmatprep.subr.bf16.mxu0 %v1943_v57  ;;  %2047 = vpow2.f32 %v528_v13 }
 0x7c4   :  { %1946 = vmatpush3.bf16.msra.mxu0 %v1943_v57 }
 0x7c5   :  { %1948 = vmatprep.subr.bf16.mxu0 %v1947_v15 }
 0x7c8   :  { %1950 = vmatpush3.bf16.msra.mxu0 %v1947_v15 }
 0x7c9   :  { %1952 = vmatprep.subr.bf16.mxu0 %v1951_v8 }
 0x7ca   :  { %v2046_v27 = vpop.eup %2045 }
 0x7cb   :  { %v2048_v23 = vpop.eup %2047  ;;  %v1444_v24 = vadd.f32 -1.0, %v2046_v27 }
 0x7cc   :  { %1954 = vmatpush3.bf16.msra.mxu0 %v1951_v8  ;;  %v1445_v16 = vadd.f32 -1.0, %v2048_v23 }
 0x7cd   :  { %1956 = vmatprep.subr.bf16.mxu0 %v1955_v14  ;;  %v536_v31 = vsel %vm520_vm7, %v516_v4, %v1444_v24 }
 0x7ce   :  { %v537_v32 = vsel %vm521_vm10, %v517_v18, %v1445_v16 }
 0x7d0   :  { %1958 = vmatpush3.bf16.msra.mxu0 %v1955_v14 }
 0x7d1   :  { %1960 = vmatprep.subr.bf16.mxu0 %v1959_v19 }
 0x7d4   :  { %1962 = vmatpush3.bf16.msra.mxu0 %v1959_v19 }
 0x7d5   :  { %1964 = vmatprep.subr.bf16.mxu0 %v1963_v26 }
 0x7d8   :  { %1966 = vmatpush3.bf16.msra.mxu0 %v1963_v26 }
 0x7db   :  { %1781 = vmatmul.mubr.f32.vlgmr.msra.gmra.mrb[8].mxu0 %v535_v30 }
 0x7dc   :  { %1783 = vmatprep.mubr.f32.mxu0 %v536_v31 }
 0x7df   :  { %1784 = vmatmul.mubr.f32.gmra.mrb[10].mxu0 %v537_v32 }
 0x8ae   :  { %v1782_v34 = vpop.f32.mrb[8].mxu0 }
 0x8af   :  { %v1110_v35 = vpop.f32.mrb[9].mxu0  ;;  %v1142_v36 = vmul.f32 %v1782_v34, %v1456_v33 }
 0x8b0   :  { %v1968_v37 = vpack.c.bf16 %v1782_v34, %v1110_v35  ;;  %v1141_v38 = vmul.f32 %v1456_v33, %v1110_v35 }
 0x8b1   :  { %1147 = vadd.xlane.f32.xlu1 %v1142_v36 }
 0x8b2   :  { %1969 = vmatpush3.bf16.xpose.msra.mxu1 %v1968_v37  ;;  %1145 = vadd.xlane.f32.xlu0 %v1141_v38  ;;  %v1785_v39 = vpop.f32.mrb[10].mxu0 }
 0x8b3   :  { %v1120_v40 = vpop.f32.mrb[11].mxu0  ;;  %v1144_v41 = vmul.f32 %v1785_v39, %v1456_v33  ;;  %1970 = vmatprep.subr.bf16.mxu1 %v2295_v28 }
 0x8b4   :  { %v1143_v42 = vmul.f32 %v1456_v33, %v1120_v40  ;;  %v1971_v43 = vpack.c.bf16 %v1785_v39, %v1120_v40  ;;  %v1132_v40 = vld [vmem:[%s2645_s9 + $0x8] sm:$0xff] }
 0x8b5   :  { %1151 = vadd.xlane.f32.xlu1 %v1144_v41  ;;  %v1131_v41 = vld [vmem:[%s2645_s9] sm:$0xff] }
 0x8b6   :  { %1149 = vadd.xlane.f32.xlu0 %v1143_v42 }
 0x8ba   :  { %1972 = vmatpush3.bf16.xpose.msra.mxu1 %v1971_v43 }
 0x8bb   :  { %1974 = vmatprep.subr.bf16.mxu1 %v1968_v37 }
 0x8c1   :  { %1795 = vmatmul.mubr.f32.vlgmr.msra.gmra.mrb[12].mxu1 %v1130_v44 }
 0x8c2   :  { %1976 = vmatpush3.bf16.msra.mxu1 %v1968_v37 }
 0x8c3   :  { %1978 = vmatprep.subr.bf16.mxu1 %v1971_v43 }
 0x8c6   :  { %1980 = vmatpush3.bf16.msra.mxu1 %v1971_v43 }
 0x93e   :  { %v1148_v45 = vpop.xlane.xlu1 %1147 }
 0x93f   :  { %v1146_v47 = vpop.xlane.xlu0 %1145 }
 0x942   :  { %v1152_v52 = vpop.xlane.xlu1 %1151 }
 0x943   :  { %v1150_v53 = vpop.xlane.xlu0 %1149 }
 0x994   :  { %v1219_v29 = vpop.f32.mrb[12].mxu1 }
 0x995   :  { %v1226_v48 = vrot.slane %v1219_v29, %v2505_v46  ;;  %v1796_v49 = vpop.f32.mrb[13].mxu1 }
 0x997   :  { %v1228_v28 = vadd.f32 %v1226_v48, %v1148_v45  ;;  %v1227_v54 = vadd.f32 %v1226_v48, %v1146_v47  ;;  %v1230_v55 = vadd.f32 %v1226_v48, %v1152_v52  ;;  %v1229_v56 = vadd.f32 %v1226_v48, %v1150_v53  ;;  %v1134_v47 = vld [vmem:[%s2645_s9 + $0x18] sm:$0xff]  ;;  %v1133_v48 = vld [vmem:[%s2645_s9 + $0x10] sm:$0xff]  ;;  %s2298_s9 = smov [#allocation16]  }
 0x998   :  { %s1421_s5 = sshll.u32 %s2298_s9, 4  ;;  %s1422_s5 = int_to_ptr.vmem [resolvable:$true] %s1421_s5 }
 0x999   :  { %vm1232_vm11 = vcmp.gt.f32.partialorder %v1228_v28, 0.0  ;;  %v1236_v57 = vmul.f32 0.2, %v1228_v28  ;;  %vm1231_vm12 = vcmp.gt.f32.partialorder %v1227_v54, 0.0  ;;  %v1235_v60 = vmul.f32 0.2, %v1227_v54  ;;  %p2254_p9 = scmp.lt.s32.totalorder %s1422_s5, %s1422_s5 }
 0x99a   :  { %vm1234_vm13 = vcmp.gt.f32.partialorder %v1230_v55, 0.0  ;;  %v1238_v61 = vmul.f32 0.2, %v1230_v55  ;;  %vm1233_vm14 = vcmp.gt.f32.partialorder %v1229_v56, 0.0  ;;  %v1237_v62 = vmul.f32 0.2, %v1229_v56 }
 0x99b   :  { %v1240_v63 = vsel %vm1232_vm11, %v1228_v28, %v1236_v57  ;;  %v1239_v0 = vsel %vm1231_vm12, %v1227_v54, %v1235_v60  ;;  %s2249_s30 = scalar_lea.vmem %s1422_s5, 512 }
 0x99c   :  { %v1244_v46 = vsel %vm146_vm1, %v1240_v63, -1e+10  ;;  %v1243_v1 = vsel %vm145_vm3, %v1239_v0, -1e+10  ;;  %v1242_v2 = vsel %vm1234_vm13, %v1230_v55, %v1238_v61  ;;  %v1241_v3 = vsel %vm1233_vm14, %v1229_v56, %v1237_v62  ;;  %p2250_p8 = scmp.ne.s32.totalorder %s1422_s5, %s2249_s30  ;;  %p2255_p10 = scmp.lt.s32.totalorder %s2249_s30, %s2249_s30 }
 0x99d   :  { %v1250_v15 = vsel %vm372_vm2, %v1244_v46, -inf  ;;  %v1247_v4 = vsel %vm372_vm2, %v1243_v1, -inf  ;;  %v1246_v5 = vsel %vm148_vm8, %v1242_v2, -1e+10  ;;  %v1245_v6 = vsel %vm147_vm9, %v1241_v3, -1e+10 }
 0x99e   :  { %1251 = vmax.xlane.f32.xlu1 %v1250_v15  ;;  %1248 = vmax.xlane.f32.xlu0 %v1247_v4  ;;  %v1256_v50 = vsel %vm372_vm2, %v1246_v5, -inf  ;;  %v1253_v7 = vsel %vm372_vm2, %v1245_v6, -inf  ;;  %p2256_p11 = por %p2255_p10, %p2254_p9 }
 0x9a0   :  { %p2257_p12 = pnand %p2256_p11, %p2250_p8 }
 0x9a2   :  { %1257 = vmax.xlane.f32.xlu1 %v1256_v50  ;;  %1254 = vmax.xlane.f32.xlu0 %v1253_v7 }
 0xa2b   :  { %v1252_v51 = vpop.xlane.xlu1 %1251  ;;  %v1249_v18 = vpop.xlane.xlu0 %1248 }
 0xa2c   :  { %v1260_v8 = vsub.f32 %v1244_v46, %v1252_v51  ;;  %v1259_v10 = vsub.f32 %v1243_v1, %v1249_v18 }
 0xa2e   :  { %v1265_v11 = vmul.f32 1.442695, %v1260_v8  ;;  %v1263_v12 = vmul.f32 1.442695, %v1259_v10 }
 0xa2f   :  { %v1258_v13 = vpop.xlane.xlu1 %1257  ;;  %v1255_v14 = vpop.xlane.xlu0 %1254 }
 0xa30   :  { %2049 = vpow2.f32 %v1265_v11  ;;  %v1262_v58 = vsub.f32 %v1246_v5, %v1258_v13  ;;  %v1261_v17 = vsub.f32 %v1245_v6, %v1255_v14 }
 0xa31   :  { %2051 = vpow2.f32 %v1263_v12 }
 0xa32   :  { %v1269_v59 = vmul.f32 1.442695, %v1262_v58  ;;  %v1267_v9 = vmul.f32 1.442695, %v1261_v17 }
 0xa34   :  { %2053 = vpow2.f32 %v1269_v59 }
 0xa35   :  { %2055 = vpow2.f32 %v1267_v9 }
 0xa3a   :  { %v2050_v19 = vpop.eup %2049 }
 0xa3b   :  { %v2052_v25 = vpop.eup %2051  ;;  %v1274_v20 = vsel %vm372_vm2, %v2050_v19, 0.0 }
 0xa3c   :  { %1275 = vadd.xlane.f32.xlu1 %v1274_v20  ;;  %v1271_v26 = vsel %vm372_vm2, %v2052_v25, 0.0 }
 0xa3d   :  { %1272 = vadd.xlane.f32.xlu0 %v1271_v26 }
 0xa3e   :  { %v2054_v21 = vpop.eup %2053 }
 0xa3f   :  { %v2056_v27 = vpop.eup %2055  ;;  %v1280_v22 = vsel %vm372_vm2, %v2054_v21, 0.0 }
 0xa40   :  { %1281 = vadd.xlane.f32.xlu1 %v1280_v22  ;;  %v1277_v23 = vsel %vm372_vm2, %v2056_v27, 0.0 }
 0xa41   :  { %1278 = vadd.xlane.f32.xlu0 %v1277_v23 }
 0xac9   :  { %v1276_v24 = vpop.xlane.xlu1 %1275 }
 0xaca   :  { %2057 = vrcp.f32 %v1276_v24  ;;  %v1273_v30 = vpop.xlane.xlu0 %1272 }
 0xacb   :  { %2059 = vrcp.f32 %v1273_v30 }
 0xacd   :  { %v1282_v16 = vpop.xlane.xlu1 %1281 }
 0xace   :  { %2061 = vrcp.f32 %v1282_v16  ;;  %v1279_v31 = vpop.xlane.xlu0 %1278 }
 0xacf   :  { %2063 = vrcp.f32 %v1279_v31 }
 0xad4   :  { %v2058_v32 = vpop.eup %2057 }
 0xad5   :  { %v2060_v33 = vpop.eup %2059  ;;  %v1288_v34 = vmul.f32 %v2058_v32, %v2050_v19 }
 0xad6   :  { %v1287_v35 = vmul.f32 %v2060_v33, %v2052_v25 }
 0xad8   :  { %v2062_v36 = vpop.eup %2061  ;;  %1805 = vmatprep.mubr.msk.f32.mxu1 %vm372_vm2, %v1287_v35 }
 0xad9   :  { %v2064_v37 = vpop.eup %2063  ;;  %1806 = vmatmul.mubr.msk.f32.vlgmr.msra.gmra.mrb[14].mxu1 %vm372_vm2, %v1288_v34  ;;  %v1290_v38 = vmul.f32 %v2062_v36, %v2054_v21 }
 0xada   :  { %v1289_v39 = vmul.f32 %v2064_v37, %v2056_v27 }
 0xadc   :  { %1808 = vmatprep.mubr.msk.f32.mxu1 %vm372_vm2, %v1289_v39 }
 0xadd   :  { %1809 = vmatmul.mubr.msk.f32.gmra.mrb[16].mxu1 %vm372_vm2, %v1290_v38 }
 0xbac   :  { %v1807_v42 = vpop.f32.mrb[14].mxu1 }
 0xbad   :  { %v1375_v43 = vadd.f32 %v1807_v42, %v1132_v40  ;;  %v1369_v44 = vpop.f32.mrb[15].mxu1 }
 0xbae   :  { %v1370_v45 = vadd.f32 %v1369_v44, %v1131_v41 }
 0xbaf   :  { %v1389_v29 = vmul.f32 1e-05, %v1375_v43 }
 0xbb0   :  { %v1388_v49 = vmul.f32 1e-05, %v1370_v45  ;;  %v1810_v52 = vpop.f32.mrb[16].mxu1 }
 0xbb1   :  { %v1398_v53 = vmul.f32 1.442695, %v1389_v29  ;;  %v1385_v28 = vadd.f32 %v1810_v52, %v1134_v47  ;;  %v1379_v54 = vpop.f32.mrb[17].mxu1  ;;  %vm1393_vm1 = vcmp.gt.f32.partialorder %v1389_v29, 0.0 }
 0xbb2   :  { %v1396_v55 = vmul.f32 1.442695, %v1388_v49  ;;  %v1380_v56 = vadd.f32 %v1379_v54, %v1133_v48  ;;  %vm1392_vm2 = vcmp.gt.f32.partialorder %v1388_v49, 0.0 }
 0xbb3   :  { %2065 = vpow2.f32 %v1398_v53  ;;  %v1391_v57 = vmul.f32 1e-05, %v1385_v28 }
 0xbb4   :  { %2067 = vpow2.f32 %v1396_v55  ;;  %v1390_v60 = vmul.f32 1e-05, %v1380_v56 }
 0xbb5   :  { %v1402_v61 = vmul.f32 1.442695, %v1391_v57  ;;  %vm1395_vm3 = vcmp.gt.f32.partialorder %v1391_v57, 0.0 }
 0xbb6   :  { %v1400_v62 = vmul.f32 1.442695, %v1390_v60  ;;  %vm1394_vm8 = vcmp.gt.f32.partialorder %v1390_v60, 0.0 }
 0xbb7   :  { %2069 = vpow2.f32 %v1402_v61 }
 0xbb8   :  { %2071 = vpow2.f32 %v1400_v62 }
 0xbbd   :  { %v2066_v63 = vpop.eup %2065 }
 0xbbe   :  { %v2068_v0 = vpop.eup %2067  ;;  %v1462_v46 = vadd.f32 -1.0, %v2066_v63 }
 0xbbf   :  { %v1461_v1 = vadd.f32 -1.0, %v2068_v0 }
 0xbc0   :  { %v1409_v2 = vsel %vm1393_vm1, %v1389_v29, %v1462_v46 }
 0xbc1   :  { %v2070_v3 = vpop.eup %2069  ;;  %1413 = vst [vmem:[#allocation16 + $0x8] sm:$0xff] %v1409_v2  ;;  %v1408_v15 = vsel %vm1392_vm2, %v1388_v49, %v1461_v1 }
 0xbc2   :  { %v2072_v4 = vpop.eup %2071  ;;  %1412 = vst [vmem:[#allocation16] sm:$0xff] %v1408_v15  ;;  %v1464_v5 = vadd.f32 -1.0, %v2070_v3 }
 0xbc3   :  { %v1463_v6 = vadd.f32 -1.0, %v2072_v4 }
 0xbc4   :  { %v1411_v50 = vsel %vm1395_vm3, %v1391_v57, %v1464_v5 }
 0xbc5   :  { %1415 = vst [vmem:[#allocation16 + $0x18] sm:$0xff] %v1411_v50  ;;  %v1410_v7 = vsel %vm1394_vm8, %v1390_v60, %v1463_v6 }
 0xbc6   :  { %1414 = vst [vmem:[#allocation16 + $0x10] sm:$0xff] %v1410_v7 }
 0xbc7   :  { %2260 = shalt.err (!%p2257_p12)
}
 0xbc8   :  { %s2261_s14 = scalar_lea.hbm %s2646_s10, 512 }
 0xbc9   :  { %p2262_p13 = scmp.ne.s32.totalorder %s2646_s10, %s2261_s14  ;;  %p2265_p0 = scmp.lt.u32.totalorder %s2261_s14, %s2646_s10 }
 0xbcb   :  { %p2267_p1 = pnand %p2265_p0, %p2262_p13 }
 0xbcd   :  { %2270 = shalt.err (!%p2267_p1)
}
 0xbce   :  { %1427 = dma.vmem_to_hbm [thread:$0]  %s1422_s5, 512, %s2646_s10, [#allocation4], %s2285_s25, %s2285_s25, %s2286_s26  }
 0xbcf   :  { %2281 = dma.done.wait [#allocation4], 512  }
 0xbd0   :  { %2282 = vsyncadd [#allocation4], 4294966784 }
 0xbd1   :  { %1431 = vsyncpa [#allocation3], 1 }
 0xbd2   :  { %1432 = vsyncpa [#allocation6], 1 }
 0xbd3   :  { %1433 = vsyncpa [#allocation9], 1 }
 0xbd4   :  { %1434 = vsyncpa [#allocation12], 1 }
 0xbd5   :  { %1435 = vsyncpa [#allocation15], 1 }
 0xbd6   :  { %1436 = vsyncpa [#allocation4], 1 }

</bundles_post_ra>
